<compile_context>
chip_gen: v7x
topology: tpu7x:2x2x1
jax: 0.10.0
libtpu: 0.0.40
codegen_flags: <defaults>
</compile_context>

<pallas_src>
import jax
import jax.numpy as jnp
import numpy as np
from jax.experimental import pallas as pl
from jax.experimental.pallas import tpu as pltpu


# --------------------------------- Pallas kernel --------------------------------

def _make_kernel(input_size, n_hidden, alpha_dim):
    D, A = input_size, alpha_dim
    n_layers = n_hidden + 1
    E = D * A            # emission-logit rows (a-major, d-minor)
    # transition rows follow: row E + (i*A + j)*D + d

    def kernel(*refs):
        x_ref = refs[0]                                   # (D, Bt)  x^T tile
        layer_refs = refs[1:1 + 2 * n_layers]             # (w, b) per layer
        logpx_ref, theta_ref = refs[-2:]                  # (A, Bt), (E, Bt)

        xT = x_ref[...]                                   # (D, Bt)

        # ---- masked MLP (MADE), weights pre-masked, batch on the lane axis ----
        h = xT
        for li in range(n_layers):
            w = layer_refs[2 * li][...]                   # (out, in)
            b = layer_refs[2 * li + 1][...]               # (out, 1)
            h = jnp.dot(w, h, preferred_element_type=jnp.float32) + b
            if li < n_layers - 1:                         # ReLU after all but last
                h = jnp.maximum(h, 0.0)
        out = h                                           # (E + D*A*A, Bt)

        # ---- theta: one dense, lane-aligned store of the raw emission logits ----
        theta_ref[...] = out[:E, :]

        # ---- Bernoulli log-prob per alpha, full (D, Bt) width ----
        # lp[j][d, b] = x[b,d]*logit - softplus(logit)
        lp = []
        for a in range(A):
            e = out[a * D:(a + 1) * D, :]
            lp.append(xT * e - (jnp.maximum(e, 0.0) + jnp.log1p(jnp.exp(-jnp.abs(e)))))

        # ---- clipped transition logits: contiguous (D, Bt) blocks per (i, j) ----
        tc = [[jnp.clip(out[E + (i * A + j) * D: E + (i * A + j + 1) * D, :],
                        -100.0, 100.0)
               for j in range(A)] for i in range(A)]

        # ---- normalize over j (full-width), build M[i][j][d, b] ----
        M = [[None] * A for _ in range(A)]
        for i in range(A):
            mx = tc[i][0]
            for j in range(1, A):
                mx = jnp.maximum(mx, tc[i][j])
            s = jnp.zeros_like(mx)
            for j in range(A):
                s = s + jnp.exp(tc[i][j] - mx)
            lognorm = mx + jnp.log(s)                      # (D, Bt) per row i
            for j in range(A):
                M[i][j] = lp[j] + tc[i][j] - lognorm       # (D, Bt)

        # ---- HMM chain over d (sequential); acc[i][j] is a full-lane (1, Bt) row ----
        acc = [[M[i][j][0:1, :] for j in range(A)] for i in range(A)]
        for d in range(1, D):
            new = [[None] * A for _ in range(A)]
            for i in range(A):
                for j in range(A):
                    terms = [acc[i][k] + M[k][j][d:d + 1, :] for k in range(A)]
                    mx = terms[0]
                    for t in terms[1:]:
                        mx = jnp.maximum(mx, t)
                    s = jnp.zeros_like(mx)
                    for t in terms:
                        s = s + jnp.exp(t - mx)
                    new[i][j] = mx + jnp.log(s)
            acc = new

        # ---- log_px[i, b] = logsumexp_j acc[i][j]  (lane-dense row stores) ----
        for i in range(A):
            mx = acc[i][0]
            for j in range(1, A):
                mx = jnp.maximum(mx, acc[i][j])
            s = jnp.zeros_like(mx)
            for j in range(A):
                s = s + jnp.exp(acc[i][j] - mx)
            logpx_ref[i:i + 1, :] = mx + jnp.log(s)

    return kernel


# --------------------------------- wrapper --------------------------------------

def _pick_batch_tile(B):
    # Batch lives on the lane axis inside the kernel -> keep blocks 128-aligned.
    for t in (512, 256, 128):
        if B % t == 0:
            return t
    return B  # small / odd batch: single full-array block


def darthmm_forward(x, params, *, input_size, hidden_size, n_hidden, alpha_dim):
    del hidden_size  # implied by the weight shapes
    B = x.shape[0]
    D, A = input_size, alpha_dim
    E = D * A

    bt = _pick_batch_tile(B)
    grid = (B // bt,)

    kernel = _make_kernel(D, n_hidden, A)

    x_t = x.T                                            # (D, B): batch on lanes

    args = [x_t]
    in_specs = [pl.BlockSpec((D, bt), lambda i: (0, i))]
    for (w, b) in params:                                # pre-masked weights only
        args += [w, b]
        in_specs += [pl.BlockSpec(w.shape, lambda i: (0, 0)),
                     pl.BlockSpec(b.shape, lambda i: (0, 0))]

    out_shape = (jax.ShapeDtypeStruct((A, B), jnp.float32),     # log_px^T
                 jax.ShapeDtypeStruct((E, B), jnp.float32))     # theta^T (a-major, d-minor)
    out_specs = (pl.BlockSpec((A, bt), lambda i: (0, i)),
                 pl.BlockSpec((E, bt), lambda i: (0, i)))

    logpx_t, theta_t = pl.pallas_call(
        kernel,
        grid=grid,
        out_shape=out_shape,
        in_specs=in_specs,
        out_specs=out_specs,
        compiler_params=pltpu.CompilerParams(
            dimension_semantics=("parallel",)),
    )(*args)

    # wrapper-side layout plumbing back to the module's conventions
    log_px = logpx_t.T                                            # (B, A)
    theta = theta_t.reshape(A, D, B).transpose(2, 1, 0).reshape(B, D, 1, A)
    return log_px, theta


# ------------------------- parameter / mask construction ------------------------

def create_masks(input_size, hidden_size, n_hidden):
    D, H = input_size, hidden_size
    degrees = [np.arange(D)]
    for _ in range(n_hidden + 1):
        degrees.append(np.arange(H) % (D - 1))
    degrees.append(np.arange(D) % D - 1)
    masks = [(d1[:, None] >= d0[None, :]).astype(np.float32)
             for d0, d1 in zip(degrees[:-1], degrees[1:])]
    return masks


def init_params(key, input_size, hidden_size, n_hidden, alpha_dim):
    """Weights in PyTorch (out, in) layout, pre-masked; final layer rows reordered:
    [all D*A emission logits (a-major, d-minor)] then [all D*A*A transitions
    ((i,j)-major, d-minor)]."""
    D, H, A = input_size, hidden_size, alpha_dim
    masks = create_masks(D, H, n_hidden)

    layer_defs = [(D, H, masks[0])]
    for i in range(n_hidden - 1):
        layer_defs.append((H, H, masks[i + 1]))
    final_mask = np.concatenate([np.tile(masks[-1], (A, 1)),          # emissions
                                 np.tile(masks[-1], (A * A, 1))],     # transitions
                                axis=0)
    layer_defs.append((H, D * A + D * A * A, final_mask))

    params = []
    for (fan_in, fan_out, mask) in layer_defs:
        key, kw, kb = jax.random.split(key, 3)
        bound = 1.0 / np.sqrt(fan_in)
        w = jax.random.uniform(kw, (fan_out, fan_in), jnp.float32, -bound, bound)
        b = jax.random.uniform(kb, (fan_out,), jnp.float32, -bound, bound)
        w_masked = w * jnp.asarray(mask, jnp.float32)   # constant-fold mask * W
        params.append((w_masked, b.reshape(fan_out, 1)))
    return params


# ------------------------------ pure-JAX reference ------------------------------

def darthmm_reference(x, params, *, input_size, n_hidden, alpha_dim):
    B, D, A = x.shape[0], input_size, alpha_dim
    E = D * A
    n_layers = n_hidden + 1
    h = x
    for li, (w, b) in enumerate(params):
        h = h @ w.T + b[:, 0]
        if li < n_layers - 1:
            h = jnp.maximum(h, 0.0)
    out = h                                                            # (B, E + D*A*A)
    theta_logits = out[:, :E].reshape(B, A, D).transpose(0, 2, 1)      # (B, D, A)
    trans = out[:, E:].reshape(B, A, A, D).transpose(0, 3, 1, 2)       # (B, D, A, A)
    trans = jnp.clip(trans, -100.0, 100.0)
    trans = trans - jax.scipy.special.logsumexp(trans, axis=-1, keepdims=True)
    lp = x[:, :, None] * theta_logits - jax.nn.softplus(theta_logits)  # (B, D, A)
    M = lp[:, :, None, :] + trans                                      # (B, D, A, A)
    acc = M[:, 0]
    for d in range(1, D):
        acc = jax.scipy.special.logsumexp(
            acc[:, :, :, None] + M[:, d][:, None, :, :], axis=2)
    log_px = jax.scipy.special.logsumexp(acc, axis=-1)                 # (B, A)
    theta = theta_logits.reshape(B, D, 1, A)
    return log_px, theta


# ------------------------------------ main ---------------------------------------

if __name__ == "__main__":
    input_size = 8
    hidden_size = 32
    n_hidden = 2
    alpha_dim = 2
    batch = 256        # multiple of 128 -> batch grid of 2 "parallel" steps

    key = jax.random.PRNGKey(0)
    key, kx = jax.random.split(key)
    # binary inputs (Bernoulli support), matching distribution='binary'
    x = jax.random.bernoulli(kx, 0.5, (batch, input_size)).astype(jnp.float32)

    params = init_params(key, input_size, hidden_size, n_hidden, alpha_dim)

    log_px, theta = darthmm_forward(
        x, params, input_size=input_size, hidden_size=hidden_size,
        n_hidden=n_hidden, alpha_dim=alpha_dim)
    jax.block_until_ready((log_px, theta))

    # sanity check against a pure-JAX reference of the same math
    ref_log_px, ref_theta = darthmm_reference(
        x, params, input_size=input_size, n_hidden=n_hidden, alpha_dim=alpha_dim)
    np.testing.assert_allclose(np.asarray(log_px), np.asarray(ref_log_px),
                               rtol=1e-4, atol=1e-4)
    np.testing.assert_allclose(np.asarray(theta), np.asarray(ref_theta),
                               rtol=1e-4, atol=1e-4)

    print("KERNEL_OK")
</pallas_src>

<mosaic_0001>
module attributes {stable_mosaic.version = 11 : i64} {
  func.func @kernel(%arg0: i32, %arg1: memref<8x256xf32, #tpu.memory_space<vmem>>, %arg2: memref<32x8xf32, #tpu.memory_space<vmem>>, %arg3: memref<32x1xf32, #tpu.memory_space<vmem>>, %arg4: memref<32x32xf32, #tpu.memory_space<vmem>>, %arg5: memref<32x1xf32, #tpu.memory_space<vmem>>, %arg6: memref<48x32xf32, #tpu.memory_space<vmem>>, %arg7: memref<48x1xf32, #tpu.memory_space<vmem>>, %arg8: memref<2x256xf32, #tpu.memory_space<vmem>>, %arg9: memref<16x256xf32, #tpu.memory_space<vmem>>) attributes {dimension_semantics = [#tpu.dimension_semantics<parallel>], iteration_bounds = array<i64: 1>, scalar_prefetch = 0 : i64, scratch_operands = 0 : i64, tpu.core_type = #tpu.core_type<tc>, window_params = [{transform_indices = @transform_0, window_bounds = array<i64: 8, 256>}, {pipeline_mode = #tpu.pipeline_mode<synchronous>, transform_indices = @transform_1, window_bounds = array<i64: 32, 8>}, {pipeline_mode = #tpu.pipeline_mode<synchronous>, transform_indices = @transform_2, window_bounds = array<i64: 32, 1>}, {pipeline_mode = #tpu.pipeline_mode<synchronous>, transform_indices = @transform_3, window_bounds = array<i64: 32, 32>}, {pipeline_mode = #tpu.pipeline_mode<synchronous>, transform_indices = @transform_4, window_bounds = array<i64: 32, 1>}, {pipeline_mode = #tpu.pipeline_mode<synchronous>, transform_indices = @transform_5, window_bounds = array<i64: 48, 32>}, {pipeline_mode = #tpu.pipeline_mode<synchronous>, transform_indices = @transform_6, window_bounds = array<i64: 48, 1>}, {transform_indices = @transform_7, window_bounds = array<i64: 2, 256>}, {transform_indices = @transform_8, window_bounds = array<i64: 16, 256>}]} {
    %c0 = arith.constant 0 : index
    %c0_0 = arith.constant 0 : index
    %0 = vector.load %arg1[%c0, %c0_0] : memref<8x256xf32, #tpu.memory_space<vmem>>, vector<8x256xf32>
    %c0_1 = arith.constant 0 : index
    %c0_2 = arith.constant 0 : index
    %1 = vector.load %arg2[%c0_1, %c0_2] : memref<32x8xf32, #tpu.memory_space<vmem>>, vector<32x8xf32>
    %c0_3 = arith.constant 0 : index
    %c0_4 = arith.constant 0 : index
    %2 = vector.load %arg3[%c0_3, %c0_4] : memref<32x1xf32, #tpu.memory_space<vmem>>, vector<32x1xf32>
    %cst = arith.constant dense<0.000000e+00> : vector<32x256xf32>
    %3 = tpu.matmul %1, %0, %cst {dimension_numbers = #tpu.dot_dimension_numbers<[1], [0], [0], [1], [0, 0, 1, 1], [], []>} : vector<32x8xf32>, vector<8x256xf32>, vector<32x256xf32> -> vector<32x256xf32>
    %4 = vector.broadcast %2 : vector<32x1xf32> to vector<32x256xf32>
    %5 = arith.addf %3, %4 : vector<32x256xf32>
    %cst_5 = arith.constant 0.000000e+00 : f32
    %6 = vector.broadcast %cst_5 : f32 to vector<32x256xf32>
    %7 = arith.maximumf %5, %6 : vector<32x256xf32>
    %c0_6 = arith.constant 0 : index
    %c0_7 = arith.constant 0 : index
    %8 = vector.load %arg4[%c0_6, %c0_7] : memref<32x32xf32, #tpu.memory_space<vmem>>, vector<32x32xf32>
    %c0_8 = arith.constant 0 : index
    %c0_9 = arith.constant 0 : index
    %9 = vector.load %arg5[%c0_8, %c0_9] : memref<32x1xf32, #tpu.memory_space<vmem>>, vector<32x1xf32>
    %cst_10 = arith.constant dense<0.000000e+00> : vector<32x256xf32>
    %10 = tpu.matmul %8, %7, %cst_10 {dimension_numbers = #tpu.dot_dimension_numbers<[1], [0], [0], [1], [0, 0, 1, 1], [], []>} : vector<32x32xf32>, vector<32x256xf32>, vector<32x256xf32> -> vector<32x256xf32>
    %11 = vector.broadcast %9 : vector<32x1xf32> to vector<32x256xf32>
    %12 = arith.addf %10, %11 : vector<32x256xf32>
    %cst_11 = arith.constant 0.000000e+00 : f32
    %13 = vector.broadcast %cst_11 : f32 to vector<32x256xf32>
    %14 = arith.maximumf %12, %13 : vector<32x256xf32>
    %c0_12 = arith.constant 0 : index
    %c0_13 = arith.constant 0 : index
    %15 = vector.load %arg6[%c0_12, %c0_13] : memref<48x32xf32, #tpu.memory_space<vmem>>, vector<48x32xf32>
    %c0_14 = arith.constant 0 : index
    %c0_15 = arith.constant 0 : index
    %16 = vector.load %arg7[%c0_14, %c0_15] : memref<48x1xf32, #tpu.memory_space<vmem>>, vector<48x1xf32>
    %cst_16 = arith.constant dense<0.000000e+00> : vector<48x256xf32>
    %17 = tpu.matmul %15, %14, %cst_16 {dimension_numbers = #tpu.dot_dimension_numbers<[1], [0], [0], [1], [0, 0, 1, 1], [], []>} : vector<48x32xf32>, vector<32x256xf32>, vector<48x256xf32> -> vector<48x256xf32>
    %18 = vector.broadcast %16 : vector<48x1xf32> to vector<48x256xf32>
    %19 = arith.addf %17, %18 : vector<48x256xf32>
    %20 = vector.extract_strided_slice %19 {offsets = [0, 0], sizes = [16, 256], strides = [1, 1]} : vector<48x256xf32> to vector<16x256xf32>
    %c0_17 = arith.constant 0 : index
    %c0_18 = arith.constant 0 : index
    %21 = vector.load %arg9[%c0_17, %c0_18] : memref<16x256xf32, #tpu.memory_space<vmem>>, vector<16x256xf32>
    tpu.vector_store %arg9[%c0_17, %c0_18], %20 {strides = array<i32>} : memref<16x256xf32, #tpu.memory_space<vmem>>, vector<16x256xf32>,
    %22 = vector.extract_strided_slice %19 {offsets = [0, 0], sizes = [8, 256], strides = [1, 1]} : vector<48x256xf32> to vector<8x256xf32>
    %23 = arith.mulf %0, %22 : vector<8x256xf32>
    %cst_19 = arith.constant 0.000000e+00 : f32
    %24 = vector.broadcast %cst_19 : f32 to vector<8x256xf32>
    %25 = arith.maximumf %22, %24 : vector<8x256xf32>
    %26 = math.absf %22 : vector<8x256xf32>
    %cst_20 = arith.constant 0.000000e+00 : f32
    %27 = vector.broadcast %cst_20 : f32 to vector<8x256xf32>
    %28 = arith.subf %27, %26 : vector<8x256xf32>
    %29 = math.exp %28 : vector<8x256xf32>
    %30 = math.log1p %29 : vector<8x256xf32>
    %31 = arith.addf %25, %30 : vector<8x256xf32>
    %32 = arith.subf %23, %31 : vector<8x256xf32>
    %33 = vector.extract_strided_slice %19 {offsets = [8, 0], sizes = [8, 256], strides = [1, 1]} : vector<48x256xf32> to vector<8x256xf32>
    %34 = arith.mulf %0, %33 : vector<8x256xf32>
    %cst_21 = arith.constant 0.000000e+00 : f32
    %35 = vector.broadcast %cst_21 : f32 to vector<8x256xf32>
    %36 = arith.maximumf %33, %35 : vector<8x256xf32>
    %37 = math.absf %33 : vector<8x256xf32>
    %cst_22 = arith.constant 0.000000e+00 : f32
    %38 = vector.broadcast %cst_22 : f32 to vector<8x256xf32>
    %39 = arith.subf %38, %37 : vector<8x256xf32>
    %40 = math.exp %39 : vector<8x256xf32>
    %41 = math.log1p %40 : vector<8x256xf32>
    %42 = arith.addf %36, %41 : vector<8x256xf32>
    %43 = arith.subf %34, %42 : vector<8x256xf32>
    %44 = vector.extract_strided_slice %19 {offsets = [16, 0], sizes = [8, 256], strides = [1, 1]} : vector<48x256xf32> to vector<8x256xf32>
    %cst_23 = arith.constant -1.000000e+02 : f32
    %cst_24 = arith.constant 1.000000e+02 : f32
    %45 = vector.broadcast %cst_23 : f32 to vector<8x256xf32>
    %46 = arith.maximumf %45, %44 : vector<8x256xf32>
    %47 = vector.broadcast %cst_24 : f32 to vector<8x256xf32>
    %48 = arith.minimumf %47, %46 : vector<8x256xf32>
    %49 = vector.extract_strided_slice %19 {offsets = [24, 0], sizes = [8, 256], strides = [1, 1]} : vector<48x256xf32> to vector<8x256xf32>
    %cst_25 = arith.constant -1.000000e+02 : f32
    %cst_26 = arith.constant 1.000000e+02 : f32
    %50 = vector.broadcast %cst_25 : f32 to vector<8x256xf32>
    %51 = arith.maximumf %50, %49 : vector<8x256xf32>
    %52 = vector.broadcast %cst_26 : f32 to vector<8x256xf32>
    %53 = arith.minimumf %52, %51 : vector<8x256xf32>
    %54 = vector.extract_strided_slice %19 {offsets = [32, 0], sizes = [8, 256], strides = [1, 1]} : vector<48x256xf32> to vector<8x256xf32>
    %cst_27 = arith.constant -1.000000e+02 : f32
    %cst_28 = arith.constant 1.000000e+02 : f32
    %55 = vector.broadcast %cst_27 : f32 to vector<8x256xf32>
    %56 = arith.maximumf %55, %54 : vector<8x256xf32>
    %57 = vector.broadcast %cst_28 : f32 to vector<8x256xf32>
    %58 = arith.minimumf %57, %56 : vector<8x256xf32>
    %59 = vector.extract_strided_slice %19 {offsets = [40, 0], sizes = [8, 256], strides = [1, 1]} : vector<48x256xf32> to vector<8x256xf32>
    %cst_29 = arith.constant -1.000000e+02 : f32
    %cst_30 = arith.constant 1.000000e+02 : f32
    %60 = vector.broadcast %cst_29 : f32 to vector<8x256xf32>
    %61 = arith.maximumf %60, %59 : vector<8x256xf32>
    %62 = vector.broadcast %cst_30 : f32 to vector<8x256xf32>
    %63 = arith.minimumf %62, %61 : vector<8x256xf32>
    %64 = arith.maximumf %48, %53 : vector<8x256xf32>
    %cst_31 = arith.constant 0.000000e+00 : f32
    %65 = vector.broadcast %cst_31 : f32 to vector<8x256xf32>
    %66 = arith.subf %48, %64 : vector<8x256xf32>
    %67 = math.exp %66 : vector<8x256xf32>
    %68 = arith.addf %65, %67 : vector<8x256xf32>
    %69 = arith.subf %53, %64 : vector<8x256xf32>
    %70 = math.exp %69 : vector<8x256xf32>
    %71 = arith.addf %68, %70 : vector<8x256xf32>
    %72 = math.log %71 : vector<8x256xf32>
    %73 = arith.addf %64, %72 : vector<8x256xf32>
    %74 = arith.addf %32, %48 : vector<8x256xf32>
    %75 = arith.subf %74, %73 : vector<8x256xf32>
    %76 = arith.addf %43, %53 : vector<8x256xf32>
    %77 = arith.subf %76, %73 : vector<8x256xf32>
    %78 = arith.maximumf %58, %63 : vector<8x256xf32>
    %cst_32 = arith.constant 0.000000e+00 : f32
    %79 = vector.broadcast %cst_32 : f32 to vector<8x256xf32>
    %80 = arith.subf %58, %78 : vector<8x256xf32>
    %81 = math.exp %80 : vector<8x256xf32>
    %82 = arith.addf %79, %81 : vector<8x256xf32>
    %83 = arith.subf %63, %78 : vector<8x256xf32>
    %84 = math.exp %83 : vector<8x256xf32>
    %85 = arith.addf %82, %84 : vector<8x256xf32>
    %86 = math.log %85 : vector<8x256xf32>
    %87 = arith.addf %78, %86 : vector<8x256xf32>
    %88 = arith.addf %32, %58 : vector<8x256xf32>
    %89 = arith.subf %88, %87 : vector<8x256xf32>
    %90 = arith.addf %43, %63 : vector<8x256xf32>
    %91 = arith.subf %90, %87 : vector<8x256xf32>
    %92 = vector.extract_strided_slice %75 {offsets = [0, 0], sizes = [1, 256], strides = [1, 1]} : vector<8x256xf32> to vector<1x256xf32>
    %93 = vector.extract_strided_slice %77 {offsets = [0, 0], sizes = [1, 256], strides = [1, 1]} : vector<8x256xf32> to vector<1x256xf32>
    %94 = vector.extract_strided_slice %89 {offsets = [0, 0], sizes = [1, 256], strides = [1, 1]} : vector<8x256xf32> to vector<1x256xf32>
    %95 = vector.extract_strided_slice %91 {offsets = [0, 0], sizes = [1, 256], strides = [1, 1]} : vector<8x256xf32> to vector<1x256xf32>
    %96 = vector.extract_strided_slice %75 {offsets = [1, 0], sizes = [1, 256], strides = [1, 1]} : vector<8x256xf32> to vector<1x256xf32>
    %97 = arith.addf %92, %96 : vector<1x256xf32>
    %98 = vector.extract_strided_slice %89 {offsets = [1, 0], sizes = [1, 256], strides = [1, 1]} : vector<8x256xf32> to vector<1x256xf32>
    %99 = arith.addf %93, %98 : vector<1x256xf32>
    %100 = arith.maximumf %97, %99 : vector<1x256xf32>
    %cst_33 = arith.constant 0.000000e+00 : f32
    %101 = vector.broadcast %cst_33 : f32 to vector<1x256xf32>
    %102 = arith.subf %97, %100 : vector<1x256xf32>
    %103 = math.exp %102 : vector<1x256xf32>
    %104 = arith.addf %101, %103 : vector<1x256xf32>
    %105 = arith.subf %99, %100 : vector<1x256xf32>
    %106 = math.exp %105 : vector<1x256xf32>
    %107 = arith.addf %104, %106 : vector<1x256xf32>
    %108 = math.log %107 : vector<1x256xf32>
    %109 = arith.addf %100, %108 : vector<1x256xf32>
    %110 = vector.extract_strided_slice %77 {offsets = [1, 0], sizes = [1, 256], strides = [1, 1]} : vector<8x256xf32> to vector<1x256xf32>
    %111 = arith.addf %92, %110 : vector<1x256xf32>
    %112 = vector.extract_strided_slice %91 {offsets = [1, 0], sizes = [1, 256], strides = [1, 1]} : vector<8x256xf32> to vector<1x256xf32>
    %113 = arith.addf %93, %112 : vector<1x256xf32>
    %114 = arith.maximumf %111, %113 : vector<1x256xf32>
    %cst_34 = arith.constant 0.000000e+00 : f32
    %115 = vector.broadcast %cst_34 : f32 to vector<1x256xf32>
    %116 = arith.subf %111, %114 : vector<1x256xf32>
    %117 = math.exp %116 : vector<1x256xf32>
    %118 = arith.addf %115, %117 : vector<1x256xf32>
    %119 = arith.subf %113, %114 : vector<1x256xf32>
    %120 = math.exp %119 : vector<1x256xf32>
    %121 = arith.addf %118, %120 : vector<1x256xf32>
    %122 = math.log %121 : vector<1x256xf32>
    %123 = arith.addf %114, %122 : vector<1x256xf32>
    %124 = vector.extract_strided_slice %75 {offsets = [1, 0], sizes = [1, 256], strides = [1, 1]} : vector<8x256xf32> to vector<1x256xf32>
    %125 = arith.addf %94, %124 : vector<1x256xf32>
    %126 = vector.extract_strided_slice %89 {offsets = [1, 0], sizes = [1, 256], strides = [1, 1]} : vector<8x256xf32> to vector<1x256xf32>
    %127 = arith.addf %95, %126 : vector<1x256xf32>
    %128 = arith.maximumf %125, %127 : vector<1x256xf32>
    %cst_35 = arith.constant 0.000000e+00 : f32
    %129 = vector.broadcast %cst_35 : f32 to vector<1x256xf32>
    %130 = arith.subf %125, %128 : vector<1x256xf32>
    %131 = math.exp %130 : vector<1x256xf32>
    %132 = arith.addf %129, %131 : vector<1x256xf32>
    %133 = arith.subf %127, %128 : vector<1x256xf32>
    %134 = math.exp %133 : vector<1x256xf32>
    %135 = arith.addf %132, %134 : vector<1x256xf32>
    %136 = math.log %135 : vector<1x256xf32>
    %137 = arith.addf %128, %136 : vector<1x256xf32>
    %138 = vector.extract_strided_slice %77 {offsets = [1, 0], sizes = [1, 256], strides = [1, 1]} : vector<8x256xf32> to vector<1x256xf32>
    %139 = arith.addf %94, %138 : vector<1x256xf32>
    %140 = vector.extract_strided_slice %91 {offsets = [1, 0], sizes = [1, 256], strides = [1, 1]} : vector<8x256xf32> to vector<1x256xf32>
    %141 = arith.addf %95, %140 : vector<1x256xf32>
    %142 = arith.maximumf %139, %141 : vector<1x256xf32>
    %cst_36 = arith.constant 0.000000e+00 : f32
    %143 = vector.broadcast %cst_36 : f32 to vector<1x256xf32>
    %144 = arith.subf %139, %142 : vector<1x256xf32>
    %145 = math.exp %144 : vector<1x256xf32>
    %146 = arith.addf %143, %145 : vector<1x256xf32>
    %147 = arith.subf %141, %142 : vector<1x256xf32>
    %148 = math.exp %147 : vector<1x256xf32>
    %149 = arith.addf %146, %148 : vector<1x256xf32>
    %150 = math.log %149 : vector<1x256xf32>
    %151 = arith.addf %142, %150 : vector<1x256xf32>
    %152 = vector.extract_strided_slice %75 {offsets = [2, 0], sizes = [1, 256], strides = [1, 1]} : vector<8x256xf32> to vector<1x256xf32>
    %153 = arith.addf %109, %152 : vector<1x256xf32>
    %154 = vector.extract_strided_slice %89 {offsets = [2, 0], sizes = [1, 256], strides = [1, 1]} : vector<8x256xf32> to vector<1x256xf32>
    %155 = arith.addf %123, %154 : vector<1x256xf32>
    %156 = arith.maximumf %153, %155 : vector<1x256xf32>
    %cst_37 = arith.constant 0.000000e+00 : f32
    %157 = vector.broadcast %cst_37 : f32 to vector<1x256xf32>
    %158 = arith.subf %153, %156 : vector<1x256xf32>
    %159 = math.exp %158 : vector<1x256xf32>
    %160 = arith.addf %157, %159 : vector<1x256xf32>
    %161 = arith.subf %155, %156 : vector<1x256xf32>
    %162 = math.exp %161 : vector<1x256xf32>
    %163 = arith.addf %160, %162 : vector<1x256xf32>
    %164 = math.log %163 : vector<1x256xf32>
    %165 = arith.addf %156, %164 : vector<1x256xf32>
    %166 = vector.extract_strided_slice %77 {offsets = [2, 0], sizes = [1, 256], strides = [1, 1]} : vector<8x256xf32> to vector<1x256xf32>
    %167 = arith.addf %109, %166 : vector<1x256xf32>
    %168 = vector.extract_strided_slice %91 {offsets = [2, 0], sizes = [1, 256], strides = [1, 1]} : vector<8x256xf32> to vector<1x256xf32>
    %169 = arith.addf %123, %168 : vector<1x256xf32>
    %170 = arith.maximumf %167, %169 : vector<1x256xf32>
    %cst_38 = arith.constant 0.000000e+00 : f32
    %171 = vector.broadcast %cst_38 : f32 to vector<1x256xf32>
    %172 = arith.subf %167, %170 : vector<1x256xf32>
    %173 = math.exp %172 : vector<1x256xf32>
    %174 = arith.addf %171, %173 : vector<1x256xf32>
    %175 = arith.subf %169, %170 : vector<1x256xf32>
    %176 = math.exp %175 : vector<1x256xf32>
    %177 = arith.addf %174, %176 : vector<1x256xf32>
    %178 = math.log %177 : vector<1x256xf32>
    %179 = arith.addf %170, %178 : vector<1x256xf32>
    %180 = vector.extract_strided_slice %75 {offsets = [2, 0], sizes = [1, 256], strides = [1, 1]} : vector<8x256xf32> to vector<1x256xf32>
    %181 = arith.addf %137, %180 : vector<1x256xf32>
    %182 = vector.extract_strided_slice %89 {offsets = [2, 0], sizes = [1, 256], strides = [1, 1]} : vector<8x256xf32> to vector<1x256xf32>
    %183 = arith.addf %151, %182 : vector<1x256xf32>
    %184 = arith.maximumf %181, %183 : vector<1x256xf32>
    %cst_39 = arith.constant 0.000000e+00 : f32
    %185 = vector.broadcast %cst_39 : f32 to vector<1x256xf32>
    %186 = arith.subf %181, %184 : vector<1x256xf32>
    %187 = math.exp %186 : vector<1x256xf32>
    %188 = arith.addf %185, %187 : vector<1x256xf32>
    %189 = arith.subf %183, %184 : vector<1x256xf32>
    %190 = math.exp %189 : vector<1x256xf32>
    %191 = arith.addf %188, %190 : vector<1x256xf32>
    %192 = math.log %191 : vector<1x256xf32>
    %193 = arith.addf %184, %192 : vector<1x256xf32>
    %194 = vector.extract_strided_slice %77 {offsets = [2, 0], sizes = [1, 256], strides = [1, 1]} : vector<8x256xf32> to vector<1x256xf32>
    %195 = arith.addf %137, %194 : vector<1x256xf32>
    %196 = vector.extract_strided_slice %91 {offsets = [2, 0], sizes = [1, 256], strides = [1, 1]} : vector<8x256xf32> to vector<1x256xf32>
    %197 = arith.addf %151, %196 : vector<1x256xf32>
    %198 = arith.maximumf %195, %197 : vector<1x256xf32>
    %cst_40 = arith.constant 0.000000e+00 : f32
    %199 = vector.broadcast %cst_40 : f32 to vector<1x256xf32>
    %200 = arith.subf %195, %198 : vector<1x256xf32>
    %201 = math.exp %200 : vector<1x256xf32>
    %202 = arith.addf %199, %201 : vector<1x256xf32>
    %203 = arith.subf %197, %198 : vector<1x256xf32>
    %204 = math.exp %203 : vector<1x256xf32>
    %205 = arith.addf %202, %204 : vector<1x256xf32>
    %206 = math.log %205 : vector<1x256xf32>
    %207 = arith.addf %198, %206 : vector<1x256xf32>
    %208 = vector.extract_strided_slice %75 {offsets = [3, 0], sizes = [1, 256], strides = [1, 1]} : vector<8x256xf32> to vector<1x256xf32>
    %209 = arith.addf %165, %208 : vector<1x256xf32>
    %210 = vector.extract_strided_slice %89 {offsets = [3, 0], sizes = [1, 256], strides = [1, 1]} : vector<8x256xf32> to vector<1x256xf32>
    %211 = arith.addf %179, %210 : vector<1x256xf32>
    %212 = arith.maximumf %209, %211 : vector<1x256xf32>
    %cst_41 = arith.constant 0.000000e+00 : f32
    %213 = vector.broadcast %cst_41 : f32 to vector<1x256xf32>
    %214 = arith.subf %209, %212 : vector<1x256xf32>
    %215 = math.exp %214 : vector<1x256xf32>
    %216 = arith.addf %213, %215 : vector<1x256xf32>
    %217 = arith.subf %211, %212 : vector<1x256xf32>
    %218 = math.exp %217 : vector<1x256xf32>
    %219 = arith.addf %216, %218 : vector<1x256xf32>
    %220 = math.log %219 : vector<1x256xf32>
    %221 = arith.addf %212, %220 : vector<1x256xf32>
    %222 = vector.extract_strided_slice %77 {offsets = [3, 0], sizes = [1, 256], strides = [1, 1]} : vector<8x256xf32> to vector<1x256xf32>
    %223 = arith.addf %165, %222 : vector<1x256xf32>
    %224 = vector.extract_strided_slice %91 {offsets = [3, 0], sizes = [1, 256], strides = [1, 1]} : vector<8x256xf32> to vector<1x256xf32>
    %225 = arith.addf %179, %224 : vector<1x256xf32>
    %226 = arith.maximumf %223, %225 : vector<1x256xf32>
    %cst_42 = arith.constant 0.000000e+00 : f32
    %227 = vector.broadcast %cst_42 : f32 to vector<1x256xf32>
    %228 = arith.subf %223, %226 : vector<1x256xf32>
    %229 = math.exp %228 : vector<1x256xf32>
    %230 = arith.addf %227, %229 : vector<1x256xf32>
    %231 = arith.subf %225, %226 : vector<1x256xf32>
    %232 = math.exp %231 : vector<1x256xf32>
    %233 = arith.addf %230, %232 : vector<1x256xf32>
    %234 = math.log %233 : vector<1x256xf32>
    %235 = arith.addf %226, %234 : vector<1x256xf32>
    %236 = vector.extract_strided_slice %75 {offsets = [3, 0], sizes = [1, 256], strides = [1, 1]} : vector<8x256xf32> to vector<1x256xf32>
    %237 = arith.addf %193, %236 : vector<1x256xf32>
    %238 = vector.extract_strided_slice %89 {offsets = [3, 0], sizes = [1, 256], strides = [1, 1]} : vector<8x256xf32> to vector<1x256xf32>
    %239 = arith.addf %207, %238 : vector<1x256xf32>
    %240 = arith.maximumf %237, %239 : vector<1x256xf32>
    %cst_43 = arith.constant 0.000000e+00 : f32
    %241 = vector.broadcast %cst_43 : f32 to vector<1x256xf32>
    %242 = arith.subf %237, %240 : vector<1x256xf32>
    %243 = math.exp %242 : vector<1x256xf32>
    %244 = arith.addf %241, %243 : vector<1x256xf32>
    %245 = arith.subf %239, %240 : vector<1x256xf32>
    %246 = math.exp %245 : vector<1x256xf32>
    %247 = arith.addf %244, %246 : vector<1x256xf32>
    %248 = math.log %247 : vector<1x256xf32>
    %249 = arith.addf %240, %248 : vector<1x256xf32>
    %250 = vector.extract_strided_slice %77 {offsets = [3, 0], sizes = [1, 256], strides = [1, 1]} : vector<8x256xf32> to vector<1x256xf32>
    %251 = arith.addf %193, %250 : vector<1x256xf32>
    %252 = vector.extract_strided_slice %91 {offsets = [3, 0], sizes = [1, 256], strides = [1, 1]} : vector<8x256xf32> to vector<1x256xf32>
    %253 = arith.addf %207, %252 : vector<1x256xf32>
    %254 = arith.maximumf %251, %253 : vector<1x256xf32>
    %cst_44 = arith.constant 0.000000e+00 : f32
    %255 = vector.broadcast %cst_44 : f32 to vector<1x256xf32>
    %256 = arith.subf %251, %254 : vector<1x256xf32>
    %257 = math.exp %256 : vector<1x256xf32>
    %258 = arith.addf %255, %257 : vector<1x256xf32>
    %259 = arith.subf %253, %254 : vector<1x256xf32>
    %260 = math.exp %259 : vector<1x256xf32>
    %261 = arith.addf %258, %260 : vector<1x256xf32>
    %262 = math.log %261 : vector<1x256xf32>
    %263 = arith.addf %254, %262 : vector<1x256xf32>
    %264 = vector.extract_strided_slice %75 {offsets = [4, 0], sizes = [1, 256], strides = [1, 1]} : vector<8x256xf32> to vector<1x256xf32>
    %265 = arith.addf %221, %264 : vector<1x256xf32>
    %266 = vector.extract_strided_slice %89 {offsets = [4, 0], sizes = [1, 256], strides = [1, 1]} : vector<8x256xf32> to vector<1x256xf32>
    %267 = arith.addf %235, %266 : vector<1x256xf32>
    %268 = arith.maximumf %265, %267 : vector<1x256xf32>
    %cst_45 = arith.constant 0.000000e+00 : f32
    %269 = vector.broadcast %cst_45 : f32 to vector<1x256xf32>
    %270 = arith.subf %265, %268 : vector<1x256xf32>
    %271 = math.exp %270 : vector<1x256xf32>
    %272 = arith.addf %269, %271 : vector<1x256xf32>
    %273 = arith.subf %267, %268 : vector<1x256xf32>
    %274 = math.exp %273 : vector<1x256xf32>
    %275 = arith.addf %272, %274 : vector<1x256xf32>
    %276 = math.log %275 : vector<1x256xf32>
    %277 = arith.addf %268, %276 : vector<1x256xf32>
    %278 = vector.extract_strided_slice %77 {offsets = [4, 0], sizes = [1, 256], strides = [1, 1]} : vector<8x256xf32> to vector<1x256xf32>
    %279 = arith.addf %221, %278 : vector<1x256xf32>
    %280 = vector.extract_strided_slice %91 {offsets = [4, 0], sizes = [1, 256], strides = [1, 1]} : vector<8x256xf32> to vector<1x256xf32>
    %281 = arith.addf %235, %280 : vector<1x256xf32>
    %282 = arith.maximumf %279, %281 : vector<1x256xf32>
    %cst_46 = arith.constant 0.000000e+00 : f32
    %283 = vector.broadcast %cst_46 : f32 to vector<1x256xf32>
    %284 = arith.subf %279, %282 : vector<1x256xf32>
    %285 = math.exp %284 : vector<1x256xf32>
    %286 = arith.addf %283, %285 : vector<1x256xf32>
    %287 = arith.subf %281, %282 : vector<1x256xf32>
    %288 = math.exp %287 : vector<1x256xf32>
    %289 = arith.addf %286, %288 : vector<1x256xf32>
    %290 = math.log %289 : vector<1x256xf32>
    %291 = arith.addf %282, %290 : vector<1x256xf32>
    %292 = vector.extract_strided_slice %75 {offsets = [4, 0], sizes = [1, 256], strides = [1, 1]} : vector<8x256xf32> to vector<1x256xf32>
    %293 = arith.addf %249, %292 : vector<1x256xf32>
    %294 = vector.extract_strided_slice %89 {offsets = [4, 0], sizes = [1, 256], strides = [1, 1]} : vector<8x256xf32> to vector<1x256xf32>
    %295 = arith.addf %263, %294 : vector<1x256xf32>
    %296 = arith.maximumf %293, %295 : vector<1x256xf32>
    %cst_47 = arith.constant 0.000000e+00 : f32
    %297 = vector.broadcast %cst_47 : f32 to vector<1x256xf32>
    %298 = arith.subf %293, %296 : vector<1x256xf32>
    %299 = math.exp %298 : vector<1x256xf32>
    %300 = arith.addf %297, %299 : vector<1x256xf32>
    %301 = arith.subf %295, %296 : vector<1x256xf32>
    %302 = math.exp %301 : vector<1x256xf32>
    %303 = arith.addf %300, %302 : vector<1x256xf32>
    %304 = math.log %303 : vector<1x256xf32>
    %305 = arith.addf %296, %304 : vector<1x256xf32>
    %306 = vector.extract_strided_slice %77 {offsets = [4, 0], sizes = [1, 256], strides = [1, 1]} : vector<8x256xf32> to vector<1x256xf32>
    %307 = arith.addf %249, %306 : vector<1x256xf32>
    %308 = vector.extract_strided_slice %91 {offsets = [4, 0], sizes = [1, 256], strides = [1, 1]} : vector<8x256xf32> to vector<1x256xf32>
    %309 = arith.addf %263, %308 : vector<1x256xf32>
    %310 = arith.maximumf %307, %309 : vector<1x256xf32>
    %cst_48 = arith.constant 0.000000e+00 : f32
    %311 = vector.broadcast %cst_48 : f32 to vector<1x256xf32>
    %312 = arith.subf %307, %310 : vector<1x256xf32>
    %313 = math.exp %312 : vector<1x256xf32>
    %314 = arith.addf %311, %313 : vector<1x256xf32>
    %315 = arith.subf %309, %310 : vector<1x256xf32>
    %316 = math.exp %315 : vector<1x256xf32>
    %317 = arith.addf %314, %316 : vector<1x256xf32>
    %318 = math.log %317 : vector<1x256xf32>
    %319 = arith.addf %310, %318 : vector<1x256xf32>
    %320 = vector.extract_strided_slice %75 {offsets = [5, 0], sizes = [1, 256], strides = [1, 1]} : vector<8x256xf32> to vector<1x256xf32>
    %321 = arith.addf %277, %320 : vector<1x256xf32>
    %322 = vector.extract_strided_slice %89 {offsets = [5, 0], sizes = [1, 256], strides = [1, 1]} : vector<8x256xf32> to vector<1x256xf32>
    %323 = arith.addf %291, %322 : vector<1x256xf32>
    %324 = arith.maximumf %321, %323 : vector<1x256xf32>
    %cst_49 = arith.constant 0.000000e+00 : f32
    %325 = vector.broadcast %cst_49 : f32 to vector<1x256xf32>
    %326 = arith.subf %321, %324 : vector<1x256xf32>
    %327 = math.exp %326 : vector<1x256xf32>
    %328 = arith.addf %325, %327 : vector<1x256xf32>
    %329 = arith.subf %323, %324 : vector<1x256xf32>
    %330 = math.exp %329 : vector<1x256xf32>
    %331 = arith.addf %328, %330 : vector<1x256xf32>
    %332 = math.log %331 : vector<1x256xf32>
    %333 = arith.addf %324, %332 : vector<1x256xf32>
    %334 = vector.extract_strided_slice %77 {offsets = [5, 0], sizes = [1, 256], strides = [1, 1]} : vector<8x256xf32> to vector<1x256xf32>
    %335 = arith.addf %277, %334 : vector<1x256xf32>
    %336 = vector.extract_strided_slice %91 {offsets = [5, 0], sizes = [1, 256], strides = [1, 1]} : vector<8x256xf32> to vector<1x256xf32>
    %337 = arith.addf %291, %336 : vector<1x256xf32>
    %338 = arith.maximumf %335, %337 : vector<1x256xf32>
    %cst_50 = arith.constant 0.000000e+00 : f32
    %339 = vector.broadcast %cst_50 : f32 to vector<1x256xf32>
    %340 = arith.subf %335, %338 : vector<1x256xf32>
    %341 = math.exp %340 : vector<1x256xf32>
    %342 = arith.addf %339, %341 : vector<1x256xf32>
    %343 = arith.subf %337, %338 : vector<1x256xf32>
    %344 = math.exp %343 : vector<1x256xf32>
    %345 = arith.addf %342, %344 : vector<1x256xf32>
    %346 = math.log %345 : vector<1x256xf32>
    %347 = arith.addf %338, %346 : vector<1x256xf32>
    %348 = vector.extract_strided_slice %75 {offsets = [5, 0], sizes = [1, 256], strides = [1, 1]} : vector<8x256xf32> to vector<1x256xf32>
    %349 = arith.addf %305, %348 : vector<1x256xf32>
    %350 = vector.extract_strided_slice %89 {offsets = [5, 0], sizes = [1, 256], strides = [1, 1]} : vector<8x256xf32> to vector<1x256xf32>
    %351 = arith.addf %319, %350 : vector<1x256xf32>
    %352 = arith.maximumf %349, %351 : vector<1x256xf32>
    %cst_51 = arith.constant 0.000000e+00 : f32
    %353 = vector.broadcast %cst_51 : f32 to vector<1x256xf32>
    %354 = arith.subf %349, %352 : vector<1x256xf32>
    %355 = math.exp %354 : vector<1x256xf32>
    %356 = arith.addf %353, %355 : vector<1x256xf32>
    %357 = arith.subf %351, %352 : vector<1x256xf32>
    %358 = math.exp %357 : vector<1x256xf32>
    %359 = arith.addf %356, %358 : vector<1x256xf32>
    %360 = math.log %359 : vector<1x256xf32>
    %361 = arith.addf %352, %360 : vector<1x256xf32>
    %362 = vector.extract_strided_slice %77 {offsets = [5, 0], sizes = [1, 256], strides = [1, 1]} : vector<8x256xf32> to vector<1x256xf32>
    %363 = arith.addf %305, %362 : vector<1x256xf32>
    %364 = vector.extract_strided_slice %91 {offsets = [5, 0], sizes = [1, 256], strides = [1, 1]} : vector<8x256xf32> to vector<1x256xf32>
    %365 = arith.addf %319, %364 : vector<1x256xf32>
    %366 = arith.maximumf %363, %365 : vector<1x256xf32>
    %cst_52 = arith.constant 0.000000e+00 : f32
    %367 = vector.broadcast %cst_52 : f32 to vector<1x256xf32>
    %368 = arith.subf %363, %366 : vector<1x256xf32>
    %369 = math.exp %368 : vector<1x256xf32>
    %370 = arith.addf %367, %369 : vector<1x256xf32>
    %371 = arith.subf %365, %366 : vector<1x256xf32>
    %372 = math.exp %371 : vector<1x256xf32>
    %373 = arith.addf %370, %372 : vector<1x256xf32>
    %374 = math.log %373 : vector<1x256xf32>
    %375 = arith.addf %366, %374 : vector<1x256xf32>
    %376 = vector.extract_strided_slice %75 {offsets = [6, 0], sizes = [1, 256], strides = [1, 1]} : vector<8x256xf32> to vector<1x256xf32>
    %377 = arith.addf %333, %376 : vector<1x256xf32>
    %378 = vector.extract_strided_slice %89 {offsets = [6, 0], sizes = [1, 256], strides = [1, 1]} : vector<8x256xf32> to vector<1x256xf32>
    %379 = arith.addf %347, %378 : vector<1x256xf32>
    %380 = arith.maximumf %377, %379 : vector<1x256xf32>
    %cst_53 = arith.constant 0.000000e+00 : f32
    %381 = vector.broadcast %cst_53 : f32 to vector<1x256xf32>
    %382 = arith.subf %377, %380 : vector<1x256xf32>
    %383 = math.exp %382 : vector<1x256xf32>
    %384 = arith.addf %381, %383 : vector<1x256xf32>
    %385 = arith.subf %379, %380 : vector<1x256xf32>
    %386 = math.exp %385 : vector<1x256xf32>
    %387 = arith.addf %384, %386 : vector<1x256xf32>
    %388 = math.log %387 : vector<1x256xf32>
    %389 = arith.addf %380, %388 : vector<1x256xf32>
    %390 = vector.extract_strided_slice %77 {offsets = [6, 0], sizes = [1, 256], strides = [1, 1]} : vector<8x256xf32> to vector<1x256xf32>
    %391 = arith.addf %333, %390 : vector<1x256xf32>
    %392 = vector.extract_strided_slice %91 {offsets = [6, 0], sizes = [1, 256], strides = [1, 1]} : vector<8x256xf32> to vector<1x256xf32>
    %393 = arith.addf %347, %392 : vector<1x256xf32>
    %394 = arith.maximumf %391, %393 : vector<1x256xf32>
    %cst_54 = arith.constant 0.000000e+00 : f32
    %395 = vector.broadcast %cst_54 : f32 to vector<1x256xf32>
    %396 = arith.subf %391, %394 : vector<1x256xf32>
    %397 = math.exp %396 : vector<1x256xf32>
    %398 = arith.addf %395, %397 : vector<1x256xf32>
    %399 = arith.subf %393, %394 : vector<1x256xf32>
    %400 = math.exp %399 : vector<1x256xf32>
    %401 = arith.addf %398, %400 : vector<1x256xf32>
    %402 = math.log %401 : vector<1x256xf32>
    %403 = arith.addf %394, %402 : vector<1x256xf32>
    %404 = vector.extract_strided_slice %75 {offsets = [6, 0], sizes = [1, 256], strides = [1, 1]} : vector<8x256xf32> to vector<1x256xf32>
    %405 = arith.addf %361, %404 : vector<1x256xf32>
    %406 = vector.extract_strided_slice %89 {offsets = [6, 0], sizes = [1, 256], strides = [1, 1]} : vector<8x256xf32> to vector<1x256xf32>
    %407 = arith.addf %375, %406 : vector<1x256xf32>
    %408 = arith.maximumf %405, %407 : vector<1x256xf32>
    %cst_55 = arith.constant 0.000000e+00 : f32
    %409 = vector.broadcast %cst_55 : f32 to vector<1x256xf32>
    %410 = arith.subf %405, %408 : vector<1x256xf32>
    %411 = math.exp %410 : vector<1x256xf32>
    %412 = arith.addf %409, %411 : vector<1x256xf32>
    %413 = arith.subf %407, %408 : vector<1x256xf32>
    %414 = math.exp %413 : vector<1x256xf32>
    %415 = arith.addf %412, %414 : vector<1x256xf32>
    %416 = math.log %415 : vector<1x256xf32>
    %417 = arith.addf %408, %416 : vector<1x256xf32>
    %418 = vector.extract_strided_slice %77 {offsets = [6, 0], sizes = [1, 256], strides = [1, 1]} : vector<8x256xf32> to vector<1x256xf32>
    %419 = arith.addf %361, %418 : vector<1x256xf32>
    %420 = vector.extract_strided_slice %91 {offsets = [6, 0], sizes = [1, 256], strides = [1, 1]} : vector<8x256xf32> to vector<1x256xf32>
    %421 = arith.addf %375, %420 : vector<1x256xf32>
    %422 = arith.maximumf %419, %421 : vector<1x256xf32>
    %cst_56 = arith.constant 0.000000e+00 : f32
    %423 = vector.broadcast %cst_56 : f32 to vector<1x256xf32>
    %424 = arith.subf %419, %422 : vector<1x256xf32>
    %425 = math.exp %424 : vector<1x256xf32>
    %426 = arith.addf %423, %425 : vector<1x256xf32>
    %427 = arith.subf %421, %422 : vector<1x256xf32>
    %428 = math.exp %427 : vector<1x256xf32>
    %429 = arith.addf %426, %428 : vector<1x256xf32>
    %430 = math.log %429 : vector<1x256xf32>
    %431 = arith.addf %422, %430 : vector<1x256xf32>
    %432 = vector.extract_strided_slice %75 {offsets = [7, 0], sizes = [1, 256], strides = [1, 1]} : vector<8x256xf32> to vector<1x256xf32>
    %433 = arith.addf %389, %432 : vector<1x256xf32>
    %434 = vector.extract_strided_slice %89 {offsets = [7, 0], sizes = [1, 256], strides = [1, 1]} : vector<8x256xf32> to vector<1x256xf32>
    %435 = arith.addf %403, %434 : vector<1x256xf32>
    %436 = arith.maximumf %433, %435 : vector<1x256xf32>
    %cst_57 = arith.constant 0.000000e+00 : f32
    %437 = vector.broadcast %cst_57 : f32 to vector<1x256xf32>
    %438 = arith.subf %433, %436 : vector<1x256xf32>
    %439 = math.exp %438 : vector<1x256xf32>
    %440 = arith.addf %437, %439 : vector<1x256xf32>
    %441 = arith.subf %435, %436 : vector<1x256xf32>
    %442 = math.exp %441 : vector<1x256xf32>
    %443 = arith.addf %440, %442 : vector<1x256xf32>
    %444 = math.log %443 : vector<1x256xf32>
    %445 = arith.addf %436, %444 : vector<1x256xf32>
    %446 = vector.extract_strided_slice %77 {offsets = [7, 0], sizes = [1, 256], strides = [1, 1]} : vector<8x256xf32> to vector<1x256xf32>
    %447 = arith.addf %389, %446 : vector<1x256xf32>
    %448 = vector.extract_strided_slice %91 {offsets = [7, 0], sizes = [1, 256], strides = [1, 1]} : vector<8x256xf32> to vector<1x256xf32>
    %449 = arith.addf %403, %448 : vector<1x256xf32>
    %450 = arith.maximumf %447, %449 : vector<1x256xf32>
    %cst_58 = arith.constant 0.000000e+00 : f32
    %451 = vector.broadcast %cst_58 : f32 to vector<1x256xf32>
    %452 = arith.subf %447, %450 : vector<1x256xf32>
    %453 = math.exp %452 : vector<1x256xf32>
    %454 = arith.addf %451, %453 : vector<1x256xf32>
    %455 = arith.subf %449, %450 : vector<1x256xf32>
    %456 = math.exp %455 : vector<1x256xf32>
    %457 = arith.addf %454, %456 : vector<1x256xf32>
    %458 = math.log %457 : vector<1x256xf32>
    %459 = arith.addf %450, %458 : vector<1x256xf32>
    %460 = vector.extract_strided_slice %75 {offsets = [7, 0], sizes = [1, 256], strides = [1, 1]} : vector<8x256xf32> to vector<1x256xf32>
    %461 = arith.addf %417, %460 : vector<1x256xf32>
    %462 = vector.extract_strided_slice %89 {offsets = [7, 0], sizes = [1, 256], strides = [1, 1]} : vector<8x256xf32> to vector<1x256xf32>
    %463 = arith.addf %431, %462 : vector<1x256xf32>
    %464 = arith.maximumf %461, %463 : vector<1x256xf32>
    %cst_59 = arith.constant 0.000000e+00 : f32
    %465 = vector.broadcast %cst_59 : f32 to vector<1x256xf32>
    %466 = arith.subf %461, %464 : vector<1x256xf32>
    %467 = math.exp %466 : vector<1x256xf32>
    %468 = arith.addf %465, %467 : vector<1x256xf32>
    %469 = arith.subf %463, %464 : vector<1x256xf32>
    %470 = math.exp %469 : vector<1x256xf32>
    %471 = arith.addf %468, %470 : vector<1x256xf32>
    %472 = math.log %471 : vector<1x256xf32>
    %473 = arith.addf %464, %472 : vector<1x256xf32>
    %474 = vector.extract_strided_slice %77 {offsets = [7, 0], sizes = [1, 256], strides = [1, 1]} : vector<8x256xf32> to vector<1x256xf32>
    %475 = arith.addf %417, %474 : vector<1x256xf32>
    %476 = vector.extract_strided_slice %91 {offsets = [7, 0], sizes = [1, 256], strides = [1, 1]} : vector<8x256xf32> to vector<1x256xf32>
    %477 = arith.addf %431, %476 : vector<1x256xf32>
    %478 = arith.maximumf %475, %477 : vector<1x256xf32>
    %cst_60 = arith.constant 0.000000e+00 : f32
    %479 = vector.broadcast %cst_60 : f32 to vector<1x256xf32>
    %480 = arith.subf %475, %478 : vector<1x256xf32>
    %481 = math.exp %480 : vector<1x256xf32>
    %482 = arith.addf %479, %481 : vector<1x256xf32>
    %483 = arith.subf %477, %478 : vector<1x256xf32>
    %484 = math.exp %483 : vector<1x256xf32>
    %485 = arith.addf %482, %484 : vector<1x256xf32>
    %486 = math.log %485 : vector<1x256xf32>
    %487 = arith.addf %478, %486 : vector<1x256xf32>
    %488 = arith.maximumf %445, %459 : vector<1x256xf32>
    %cst_61 = arith.constant 0.000000e+00 : f32
    %489 = vector.broadcast %cst_61 : f32 to vector<1x256xf32>
    %490 = arith.subf %445, %488 : vector<1x256xf32>
    %491 = math.exp %490 : vector<1x256xf32>
    %492 = arith.addf %489, %491 : vector<1x256xf32>
    %493 = arith.subf %459, %488 : vector<1x256xf32>
    %494 = math.exp %493 : vector<1x256xf32>
    %495 = arith.addf %492, %494 : vector<1x256xf32>
    %496 = math.log %495 : vector<1x256xf32>
    %497 = arith.addf %488, %496 : vector<1x256xf32>
    %c0_62 = arith.constant 0 : index
    %c0_63 = arith.constant 0 : index
    %498 = vector.load %arg8[%c0_62, %c0_63] : memref<2x256xf32, #tpu.memory_space<vmem>>, vector<1x256xf32>
    tpu.vector_store %arg8[%c0_62, %c0_63], %497 {strides = array<i32>} : memref<2x256xf32, #tpu.memory_space<vmem>>, vector<1x256xf32>,
    %499 = arith.maximumf %473, %487 : vector<1x256xf32>
    %cst_64 = arith.constant 0.000000e+00 : f32
    %500 = vector.broadcast %cst_64 : f32 to vector<1x256xf32>
    %501 = arith.subf %473, %499 : vector<1x256xf32>
    %502 = math.exp %501 : vector<1x256xf32>
    %503 = arith.addf %500, %502 : vector<1x256xf32>
    %504 = arith.subf %487, %499 : vector<1x256xf32>
    %505 = math.exp %504 : vector<1x256xf32>
    %506 = arith.addf %503, %505 : vector<1x256xf32>
    %507 = math.log %506 : vector<1x256xf32>
    %508 = arith.addf %499, %507 : vector<1x256xf32>
    %c1 = arith.constant 1 : index
    %c0_65 = arith.constant 0 : index
    %509 = vector.load %arg8[%c1, %c0_65] : memref<2x256xf32, #tpu.memory_space<vmem>>, vector<1x256xf32>
    tpu.vector_store %arg8[%c1, %c0_65], %508 {strides = array<i32>} : memref<2x256xf32, #tpu.memory_space<vmem>>, vector<1x256xf32>,
    return
  }
  func.func @transform_0(%arg0: i32) -> (i32, i32) {
    %c0_i32 = arith.constant 0 : i32
    %c0_i32_0 = arith.constant 0 : i32
    return %c0_i32, %arg0 : i32, i32
  }
  func.func @transform_1(%arg0: i32) -> (i32, i32) {
    %c0_i32 = arith.constant 0 : i32
    %c0_i32_0 = arith.constant 0 : i32
    %c0_i32_1 = arith.constant 0 : i32
    return %c0_i32, %c0_i32_0 : i32, i32
  }
  func.func @transform_2(%arg0: i32) -> (i32, i32) {
    %c0_i32 = arith.constant 0 : i32
    %c0_i32_0 = arith.constant 0 : i32
    %c0_i32_1 = arith.constant 0 : i32
    return %c0_i32, %c0_i32_0 : i32, i32
  }
  func.func @transform_3(%arg0: i32) -> (i32, i32) {
    %c0_i32 = arith.constant 0 : i32
    %c0_i32_0 = arith.constant 0 : i32
    %c0_i32_1 = arith.constant 0 : i32
    return %c0_i32, %c0_i32_0 : i32, i32
  }
  func.func @transform_4(%arg0: i32) -> (i32, i32) {
    %c0_i32 = arith.constant 0 : i32
    %c0_i32_0 = arith.constant 0 : i32
    %c0_i32_1 = arith.constant 0 : i32
    return %c0_i32, %c0_i32_0 : i32, i32
  }
  func.func @transform_5(%arg0: i32) -> (i32, i32) {
    %c0_i32 = arith.constant 0 : i32
    %c0_i32_0 = arith.constant 0 : i32
    %c0_i32_1 = arith.constant 0 : i32
    return %c0_i32, %c0_i32_0 : i32, i32
  }
  func.func @transform_6(%arg0: i32) -> (i32, i32) {
    %c0_i32 = arith.constant 0 : i32
    %c0_i32_0 = arith.constant 0 : i32
    %c0_i32_1 = arith.constant 0 : i32
    return %c0_i32, %c0_i32_0 : i32, i32
  }
  func.func @transform_7(%arg0: i32) -> (i32, i32) {
    %c0_i32 = arith.constant 0 : i32
    %c0_i32_0 = arith.constant 0 : i32
    return %c0_i32, %arg0 : i32, i32
  }
  func.func @transform_8(%arg0: i32) -> (i32, i32) {
    %c0_i32 = arith.constant 0 : i32
    %c0_i32_0 = arith.constant 0 : i32
    return %c0_i32, %arg0 : i32, i32
  }
}

</mosaic_0001>

<bundles_post_ra>
// kernel: tpu_custom_call.1
= control target key start
LH: loop header
LB: loop body
LE: loop exit
PB: predicated region body
PF: predicated region fallthrough
CT: control target
= control target key end

     0   :  { %14 = vsyncpa [#allocation3], 0  ;;  %vm60_vm0 = vcmask 64512   ;;  %v2141_v3 = vmov 0.0   ;;  %v2142_v4 = vmov 0   ;;  %s2890_s0 = inlined_call_operand.vmem [shape: f32[8,256], index: 0, kind: input, shape index: {}]   ;;  %s2891_s1 = inlined_call_operand.vmem [shape: f32[32,8], index: 1, kind: input, shape index: {}]   ;;  %s2892_s2 = inlined_call_operand.vmem [shape: f32[32,1], index: 2, kind: input, shape index: {}]   ;;  %s2893_s3 = inlined_call_operand.vmem [shape: f32[32,32], index: 3, kind: input, shape index: {}]   ;;  %s2894_s4 = inlined_call_operand.vmem [shape: f32[32,1], index: 4, kind: input, shape index: {}]   ;;  %s2895_s5 = inlined_call_operand.vmem [shape: f32[48,32], index: 5, kind: input, shape index: {}]   ;;  %s2896_s6 = inlined_call_operand.vmem [shape: f32[48,1], index: 6, kind: input, shape index: {}]   ;;  %s2897_s7 = inlined_call_operand.hbm [shape: f32[2,256], index: 7, kind: output, shape index: {0}]   ;;  %s2898_s8 = inlined_call_operand.hbm [shape: f32[16,256], index: 8, kind: output, shape index: {1}]  }
   0x1   :  { %v2196_v0 = vld [vmem:[%s2890_s0 + $0x8] sm:$0xff]  ;;  %v2201_v1 = vld [vmem:[%s2890_s0] sm:$0xff]  ;;  %137 = vmatprep.mubr.f32.mxu1 %v2141_v3  ;;  %1691 = vset.pattern.permute.xlu0 %v2142_v4  ;;  %v38_v6 = vld [vmem:[%s2892_s2 + $0x10] sm:$0xff] }
   0x2   :  { %v32_v2 = vld [vmem:[%s2891_s1] sm:$0xff]  ;;  %73 = vmatprep.subr.mxu1 %v2196_v0  ;;  %v33_v7 = vld [vmem:[%s2891_s1 + $0x8] sm:$0xff]  ;;  %1692 = vset.pattern.permute.xlu1 %v2142_v4  ;;  %v39_v9 = vld [vmem:[%s2892_s2 + $0x18] sm:$0xff] }
   0x3   :  { %74 = vmatpush1.msra.mxu1 %v2201_v1  ;;  %v36_v5 = vld [vmem:[%s2892_s2] sm:$0xff]  ;;  %v37_v8 = vld [vmem:[%s2892_s2 + $0x8] sm:$0xff]  ;;  %52 = vperm.xlu1 %1692, %v38_v6  }
   0x4   :  { %1646 = vmatmul.mubr.msk.f32.vlgmr.msra.gmra.mrb[0].mxu1 %vm60_vm0, %v32_v2  ;;  %42 = vperm.xlu0 %1691, %v36_v5  }
   0x5   :  { %143 = vmatprep.mubr.f32.mxu1 %v2141_v3  ;;  %432 = vmatprep.mubr.f32.mxu0 %v2141_v3 }
   0x6   :  { %15 = vsyncpa [#allocation5], 0  ;;  %v34_v10 = vld [vmem:[%s2891_s1 + $0x10] sm:$0xff]  ;;  %v174_v11 = vld [vmem:[%s2894_s4] sm:$0xff]  ;;  %vm198_vm1 = vcmask 261120  }
   0x7   :  { %57 = vperm.xlu1 %1692, %v39_v9   ;;  %v175_v12 = vld [vmem:[%s2894_s4 + $0x8] sm:$0xff]  ;;  %v35_v13 = vld [vmem:[%s2891_s1 + $0x18] sm:$0xff]  ;;  %v176_v14 = vld [vmem:[%s2894_s4 + $0x10] sm:$0xff] }
   0x8   :  { %1647 = vmatmul.mubr.msk.f32.gmra.mrb[2].mxu1 %vm60_vm0, %v33_v7  ;;  %47 = vperm.xlu0 %1691, %v37_v8   ;;  %v177_v15 = vld [vmem:[%s2894_s4 + $0x18] sm:$0xff]  ;;  %v314_v16 = vld [vmem:[%s2896_s6] sm:$0xff]  ;;  %v315_v17 = vld [vmem:[%s2896_s6 + $0x8] sm:$0xff] }
   0x9   :  { %149 = vmatprep.mubr.f32.mxu1 %v2141_v3  ;;  %v316_v18 = vld [vmem:[%s2896_s6 + $0x10] sm:$0xff]  ;;  %v317_v19 = vld [vmem:[%s2896_s6 + $0x18] sm:$0xff]  ;;  %v318_v20 = vld [vmem:[%s2896_s6 + $0x20] sm:$0xff] }
   0xa   :  { %v319_v21 = vld [vmem:[%s2896_s6 + $0x28] sm:$0xff]  ;;  %v170_v54 = vld [vmem:[%s2893_s3] sm:$0xff]  ;;  %v172_v56 = vld [vmem:[%s2893_s3 + $0x10] sm:$0xff] }
   0xb   :  { %185 = vperm.xlu1 %1692, %v175_v12   ;;  %v171_v55 = vld [vmem:[%s2893_s3 + $0x8] sm:$0xff]  ;;  %v173_v57 = vld [vmem:[%s2893_s3 + $0x18] sm:$0xff] }
   0xc   :  { %1648 = vmatmul.mubr.msk.f32.gmra.mrb[4].mxu1 %vm60_vm0, %v34_v10  ;;  %180 = vperm.xlu0 %1691, %v174_v11  }
   0xd   :  { %155 = vmatprep.mubr.f32.mxu1 %v2141_v3 }
   0xf   :  { %195 = vperm.xlu1 %1692, %v177_v15  }
  0x10   :  { %1649 = vmatmul.mubr.msk.f32.gmra.mrb[6].mxu1 %vm60_vm0, %v35_v13  ;;  %190 = vperm.xlu0 %1691, %v176_v14  }
  0x11   :  { %275 = vmatprep.mubr.f32.mxu1 %v2141_v3 }
  0x13   :  { %327 = vperm.xlu1 %1692, %v315_v17  }
  0x14   :  { %322 = vperm.xlu0 %1691, %v314_v16  }
  0x17   :  { %337 = vperm.xlu1 %1692, %v317_v19  }
  0x18   :  { %332 = vperm.xlu0 %1691, %v316_v18  }
  0x1b   :  { %347 = vperm.xlu1 %1692, %v319_v21  }
  0x1c   :  { %342 = vperm.xlu0 %1691, %v318_v20  }
  0x82   :  { %v53_v31 = vpop.permute.xlu1 %52 }
  0x83   :  { %v43_v22 = vpop.permute.xlu0 %42 }
  0x86   :  { %v58_v42 = vpop.permute.xlu1 %57 }
  0x87   :  { %v48_v26 = vpop.permute.xlu0 %47 }
  0x8a   :  { %v186_v62 = vpop.permute.xlu1 %185 }
  0x8b   :  { %v181_v60 = vpop.permute.xlu0 %180 }
  0x8e   :  { %v196_v17 = vpop.permute.xlu1 %195 }
  0x8f   :  { %v191_v14 = vpop.permute.xlu0 %190 }
  0xd7   :  { %v139_v23 = vpop.f32.mrb[0].mxu1 }
  0xd8   :  { %v141_v24 = vpop.f32.mrb[1].mxu1  ;;  %v140_v25 = vadd.f32 %v139_v23, %v43_v22 }
  0xd9   :  { %v142_v27 = vadd.f32 %v141_v24, %v43_v22 }
  0xda   :  { %v162_v33 = vmax.f32 %v140_v25, 0.0 }
  0xdb   :  { %v145_v28 = vpop.f32.mrb[2].mxu1  ;;  %v163_v35 = vmax.f32 %v142_v27, 0.0 }
  0xdc   :  { %v146_v29 = vadd.f32 %v145_v28, %v48_v26  ;;  %v147_v30 = vpop.f32.mrb[3].mxu1 }
  0xdd   :  { %v148_v32 = vadd.f32 %v147_v30, %v48_v26  ;;  %v309_v30 = vld [vmem:[%s2895_s5 + $0x8] sm:$0xff] }
  0xde   :  { %v164_v34 = vmax.f32 %v146_v29, 0.0  ;;  %v308_v29 = vld [vmem:[%s2895_s5] sm:$0xff] }
  0xdf   :  { %v165_v36 = vmax.f32 %v148_v32, 0.0  ;;  %v151_v37 = vpop.f32.mrb[4].mxu1  ;;  %v311_v32 = vld [vmem:[%s2895_s5 + $0x18] sm:$0xff] }
  0xe0   :  { %v1670_v38 = vpack.c.bf16 %v164_v34, %v162_v33  ;;  %v153_v39 = vpop.f32.mrb[5].mxu1  ;;  %v152_v41 = vadd.f32 %v151_v37, %v53_v31  ;;  %v312_v33 = vld [vmem:[%s2895_s5 + $0x20] sm:$0xff]  ;;  %v313_v34 = vld [vmem:[%s2895_s5 + $0x28] sm:$0xff] }
  0xe1   :  { %v1668_v40 = vpack.c.bf16 %v165_v36, %v163_v35  ;;  %v154_v43 = vadd.f32 %v153_v39, %v53_v31  ;;  %v310_v31 = vld [vmem:[%s2895_s5 + $0x10] sm:$0xff]  ;;  %v323_v35 = vpop.permute.xlu0 %322  ;;  %s2143_s5 = smov [#allocation4]  }
  0xe2   :  { %v166_v48 = vmax.f32 %v152_v41, 0.0  ;;  %v328_v41 = vpop.permute.xlu1 %327  ;;  %s1631_s12 = sshll.u32 %s2143_s5, 4  ;;  %s1632_s12 = int_to_ptr.vmem [resolvable:$true] %s1631_s12 }
  0xe3   :  { %v157_v44 = vpop.f32.mrb[6].mxu1  ;;  %1669 = vmatprep.subr.bf16.mxu1 %v1668_v40  ;;  %v167_v50 = vmax.f32 %v154_v43, 0.0  ;;  %s2093_s0 = scalar_lea.vmem %s1632_s12, 512  ;;  %p2098_p1 = scmp.lt.s32.totalorder %s1632_s12, %s1632_s12 }
  0xe4   :  { %v158_v45 = vadd.f32 %v157_v44, %v58_v42  ;;  %v159_v46 = vpop.f32.mrb[7].mxu1  ;;  %1671 = vmatpush1.bf16.msra.mxu1 %v1670_v38  ;;  %p2094_p0 = scmp.ne.s32.totalorder %s1632_s12, %s2093_s0  ;;  %p2099_p2 = scmp.lt.s32.totalorder %s2093_s0, %s2093_s0 }
  0xe5   :  { %v160_v47 = vadd.f32 %v159_v46, %v58_v42 }
  0xe6   :  { %v168_v49 = vmax.f32 %v158_v45, 0.0  ;;  %p2100_p3 = por %p2099_p2, %p2098_p1 }
  0xe7   :  { %v169_v51 = vmax.f32 %v160_v47, 0.0 }
  0xe8   :  { %v1674_v52 = vpack.c.bf16 %v168_v49, %v166_v48  ;;  %p2101_p4 = pnand %p2100_p3, %p2094_p0 }
  0xe9   :  { %v1672_v53 = vpack.c.bf16 %v169_v51, %v167_v50 }
  0xeb   :  { %1673 = vmatprep.subr.bf16.mxu1 %v1672_v53 }
  0xec   :  { %1675 = vmatpush1.bf16.msra.mxu1 %v1674_v52 }
  0xef   :  { %1650 = vmatmul.mubr.msk.f32.vlgmr.msra.gmra.mrb[8].mxu1 %vm198_vm1, %v170_v54 }
  0xf0   :  { %281 = vmatprep.mubr.f32.mxu1 %v2141_v3 }
  0xf3   :  { %1651 = vmatmul.mubr.msk.f32.gmra.mrb[10].mxu1 %vm198_vm1, %v171_v55  ;;  %v333_v55 = vpop.permute.xlu0 %332 }
  0xf4   :  { %287 = vmatprep.mubr.f32.mxu1 %v2141_v3 }
  0xf7   :  { %1652 = vmatmul.mubr.msk.f32.gmra.mrb[12].mxu1 %vm198_vm1, %v172_v56 }
  0xf8   :  { %293 = vmatprep.mubr.f32.mxu1 %v2141_v3 }
  0xfb   :  { %1653 = vmatmul.mubr.msk.f32.gmra.mrb[14].mxu1 %vm198_vm1, %v173_v57 }
 0x1c2   :  { %v277_v58 = vpop.f32.mrb[8].mxu1 }
 0x1c3   :  { %v279_v59 = vpop.f32.mrb[9].mxu1  ;;  %v278_v61 = vadd.f32 %v277_v58, %v181_v60 }
 0x1c4   :  { %v280_v63 = vadd.f32 %v279_v59, %v181_v60  ;;  %v338_v59 = vpop.permute.xlu1 %337 }
 0x1c5   :  { %v300_v7 = vmax.f32 %v278_v61, 0.0 }
 0x1c6   :  { %v283_v2 = vpop.f32.mrb[10].mxu1  ;;  %v301_v9 = vmax.f32 %v280_v63, 0.0 }
 0x1c7   :  { %v284_v4 = vadd.f32 %v283_v2, %v186_v62  ;;  %v285_v5 = vpop.f32.mrb[11].mxu1 }
 0x1c8   :  { %v286_v6 = vadd.f32 %v285_v5, %v186_v62 }
 0x1c9   :  { %v302_v8 = vmax.f32 %v284_v4, 0.0 }
 0x1ca   :  { %v303_v10 = vmax.f32 %v286_v6, 0.0  ;;  %v289_v11 = vpop.f32.mrb[12].mxu1 }
 0x1cb   :  { %v291_v12 = vpop.f32.mrb[13].mxu1  ;;  %v1678_v13 = vpack.c.bf16 %v302_v8, %v300_v7  ;;  %v290_v16 = vadd.f32 %v289_v11, %v191_v14 }
 0x1cc   :  { %v1676_v15 = vpack.c.bf16 %v303_v10, %v301_v9  ;;  %v292_v18 = vadd.f32 %v291_v12, %v191_v14 }
 0x1cd   :  { %v304_v23 = vmax.f32 %v290_v16, 0.0 }
 0x1ce   :  { %v295_v19 = vpop.f32.mrb[14].mxu1  ;;  %1677 = vmatprep.subr.bf16.mxu0 %v1676_v15  ;;  %v305_v25 = vmax.f32 %v292_v18, 0.0 }
 0x1cf   :  { %v296_v20 = vadd.f32 %v295_v19, %v196_v17  ;;  %v297_v21 = vpop.f32.mrb[15].mxu1  ;;  %1679 = vmatpush1.bf16.msra.mxu0 %v1678_v13 }
 0x1d0   :  { %v298_v22 = vadd.f32 %v297_v21, %v196_v17 }
 0x1d1   :  { %v306_v24 = vmax.f32 %v296_v20, 0.0 }
 0x1d2   :  { %v307_v26 = vmax.f32 %v298_v22, 0.0 }
 0x1d3   :  { %v1682_v27 = vpack.c.bf16 %v306_v24, %v304_v23 }
 0x1d4   :  { %v1680_v28 = vpack.c.bf16 %v307_v26, %v305_v25 }
 0x1d6   :  { %1681 = vmatprep.subr.bf16.mxu0 %v1680_v28 }
 0x1d7   :  { %1683 = vmatpush1.bf16.msra.mxu0 %v1682_v27 }
 0x1da   :  { %1654 = vmatmul.mubr.msk.f32.vlgmr.msra.gmra.mrb[0].mxu0 %vm198_vm1, %v308_v29 }
 0x1db   :  { %438 = vmatprep.mubr.f32.mxu0 %v2141_v3 }
 0x1de   :  { %1655 = vmatmul.mubr.msk.f32.gmra.mrb[2].mxu0 %vm198_vm1, %v309_v30 }
 0x1df   :  { %444 = vmatprep.mubr.f32.mxu0 %v2141_v3 }
 0x1e2   :  { %1656 = vmatmul.mubr.msk.f32.gmra.mrb[4].mxu0 %vm198_vm1, %v310_v31 }
 0x1e3   :  { %450 = vmatprep.mubr.f32.mxu0 %v2141_v3 }
 0x1e6   :  { %1657 = vmatmul.mubr.msk.f32.gmra.mrb[6].mxu0 %vm198_vm1, %v311_v32 }
 0x1e7   :  { %456 = vmatprep.mubr.f32.mxu0 %v2141_v3 }
 0x1ea   :  { %1658 = vmatmul.mubr.msk.f32.gmra.mrb[8].mxu0 %vm198_vm1, %v312_v33  ;;  %v343_v33 = vpop.permute.xlu0 %342 }
 0x1eb   :  { %462 = vmatprep.mubr.f32.mxu0 %v2141_v3 }
 0x1ee   :  { %1659 = vmatmul.mubr.msk.f32.gmra.mrb[10].mxu0 %vm198_vm1, %v313_v34 }
 0x2ad   :  { %v434_v36 = vpop.f32.mrb[0].mxu0 }
 0x2ae   :  { %v2317_v37 = vadd.f32 %v434_v36, %v323_v35  ;;  %v436_v38 = vpop.f32.mrb[1].mxu0 }
 0x2af   :  { %v2319_v39 = vadd.f32 %v436_v38, %v323_v35 }
 0x2b0   :  { %469 = vst [vmem:[#allocation4] sm:$0xff] %v2317_v37  ;;  %v477_v40 = vand.u32 2147483647, %v2317_v37  ;;  %v2357_v20 = vmul.f32 %v2317_v37, %v2201_v1  ;;  %v475_v21 = vmax.f32 %v2317_v37, 0.0 }
 0x2b1   :  { %470 = vst [vmem:[#allocation4 + $0x8] sm:$0xff] %v2319_v39  ;;  %v478_v3 = vand.u32 2147483647, %v2319_v39  ;;  %v440_v42 = vpop.f32.mrb[2].mxu0  ;;  %v2362_v24 = vmul.f32 %v2319_v39, %v2196_v0  ;;  %v476_v25 = vmax.f32 %v2319_v39, 0.0 }
 0x2b2   :  { %v479_v43 = vsub.f32 0.0, %v477_v40  ;;  %v2325_v44 = vadd.f32 %v440_v42, %v328_v41  ;;  %v442_v45 = vpop.f32.mrb[3].mxu0 }
 0x2b3   :  { %v480_v46 = vsub.f32 0.0, %v478_v3  ;;  %v2327_v47 = vadd.f32 %v442_v45, %v328_v41  ;;  %v348_v45 = vpop.permute.xlu1 %347 }
 0x2b4   :  { %v481_v48 = vmul.f32 1.442695, %v479_v43  ;;  %471 = vst [vmem:[#allocation4 + $0x10] sm:$0xff] %v2325_v44  ;;  %v511_v49 = vand.u32 2147483647, %v2325_v44  ;;  %v2367_v26 = vmul.f32 %v2325_v44, %v2201_v1  ;;  %v509_v29 = vmax.f32 %v2325_v44, 0.0 }
 0x2b5   :  { %v483_v50 = vmul.f32 1.442695, %v480_v46  ;;  %472 = vst [vmem:[#allocation4 + $0x18] sm:$0xff] %v2327_v47  ;;  %v512_v51 = vand.u32 2147483647, %v2327_v47  ;;  %v446_v52 = vpop.f32.mrb[4].mxu0  ;;  %v2372_v34 = vmul.f32 %v2327_v47, %v2196_v0 }
 0x2b6   :  { %1693 = vpow2.f32 %v481_v48  ;;  %v513_v53 = vsub.f32 0.0, %v511_v49  ;;  %v448_v54 = vpop.f32.mrb[5].mxu0  ;;  %v447_v58 = vadd.f32 %v446_v52, %v333_v55  ;;  %v510_v35 = vmax.f32 %v2327_v47, 0.0 }
 0x2b7   :  { %1695 = vpow2.f32 %v483_v50  ;;  %v514_v56 = vsub.f32 0.0, %v512_v51  ;;  %v449_v61 = vadd.f32 %v448_v54, %v333_v55 }
 0x2b8   :  { %v515_v57 = vmul.f32 1.442695, %v513_v53  ;;  %v2333_v5 = vclamps-f32 %v447_v58, 100.0 }
 0x2b9   :  { %v517_v60 = vmul.f32 1.442695, %v514_v56  ;;  %v452_v62 = vpop.f32.mrb[6].mxu0  ;;  %v2337_v7 = vclamps-f32 %v449_v61, 100.0 }
 0x2ba   :  { %1697 = vpow2.f32 %v515_v57  ;;  %v453_v63 = vadd.f32 %v452_v62, %v338_v59  ;;  %v454_v2 = vpop.f32.mrb[7].mxu0 }
 0x2bb   :  { %1699 = vpow2.f32 %v517_v60  ;;  %v455_v4 = vadd.f32 %v454_v2, %v338_v59 }
 0x2bc   :  { %v2335_v6 = vclamps-f32 %v453_v63, 100.0 }
 0x2bd   :  { %v2339_v8 = vclamps-f32 %v455_v4, 100.0  ;;  %v458_v9 = vpop.f32.mrb[8].mxu0 }
 0x2be   :  { %v2343_v10 = vmax.f32 %v2333_v5, %v2335_v6  ;;  %v460_v11 = vpop.f32.mrb[9].mxu0  ;;  %v459_v41 = vadd.f32 %v458_v9, %v343_v33 }
 0x2bf   :  { %v2347_v12 = vmax.f32 %v2337_v7, %v2339_v8  ;;  %v461_v43 = vadd.f32 %v460_v11, %v343_v33 }
 0x2c0   :  { %v1694_v13 = vpop.eup %1693  ;;  %v559_v14 = vsub.f32 %v2333_v5, %v2343_v10  ;;  %v567_v15 = vsub.f32 %v2335_v6, %v2343_v10  ;;  %v1664_v57 = vclamps-f32 %v459_v41, 100.0 }
 0x2c1   :  { %v1696_v16 = vpop.eup %1695  ;;  %v485_v17 = vadd.f32 1.0, %v1694_v13  ;;  %v560_v18 = vsub.f32 %v2337_v7, %v2347_v12  ;;  %v464_v19 = vpop.f32.mrb[10].mxu0  ;;  %v488_v30 = vmul.f32 -0.5, %v1694_v13  ;;  %v491_v3 = vand.u32 2147483647, %v1694_v13 }
 0x2c2   :  { %v494_v22 = vadd.f32 1.0, %v1696_v16  ;;  %v561_v23 = vmul.f32 1.442695, %v559_v14  ;;  %v466_v27 = vpop.f32.mrb[11].mxu0  ;;  %v569_v31 = vmul.f32 1.442695, %v567_v15  ;;  %v568_v0 = vsub.f32 %v2339_v8, %v2347_v12 }
 0x2c3   :  { %1701 = vlog2.f32 %v485_v17  ;;  %v497_v36 = vmul.f32 -0.5, %v1696_v16  ;;  %v563_v40 = vmul.f32 1.442695, %v560_v18  ;;  %v489_v46 = vadd.f32 1.0, %v488_v30 }
 0x2c4   :  { %v1698_v28 = vpop.eup %1697  ;;  %1703 = vlog2.f32 %v494_v22  ;;  %v500_v48 = vand.u32 2147483647, %v1696_v16  ;;  %v465_v51 = vadd.f32 %v464_v19, %v348_v45  ;;  %v571_v53 = vmul.f32 1.442695, %v568_v0 }
 0x2c5   :  { %v1700_v32 = vpop.eup %1699  ;;  %v519_v38 = vadd.f32 1.0, %v1698_v28  ;;  %1705 = vpow2.f32 %v561_v23  ;;  %v522_v42 = vmul.f32 -0.5, %v1698_v28  ;;  %v498_v49 = vadd.f32 1.0, %v497_v36 }
 0x2c6   :  { %v528_v1 = vadd.f32 1.0, %v1700_v32  ;;  %v525_v50 = vand.u32 2147483647, %v1698_v28  ;;  %v531_v52 = vmul.f32 -0.5, %v1700_v32  ;;  %v467_v54 = vadd.f32 %v466_v27, %v348_v45 }
 0x2c7   :  { %1707 = vlog2.f32 %v519_v38  ;;  %vm2377_vm2 = vcmp.lt.f32.partialorder %v491_v3, 0.0004427343  ;;  %v523_v56 = vadd.f32 1.0, %v522_v42  ;;  %v1666_v58 = vclamps-f32 %v465_v51, 100.0 }
 0x2c8   :  { %1709 = vpow2.f32 %v569_v31  ;;  %v534_v59 = vand.u32 2147483647, %v1700_v32  ;;  %v1665_v60 = vclamps-f32 %v461_v43, 100.0  ;;  %v1667_v61 = vclamps-f32 %v467_v54, 100.0 }
 0x2c9   :  { %1711 = vlog2.f32 %v528_v1  ;;  %v490_v63 = vmul.f32 %v1694_v13, %v489_v46  ;;  %v499_v2 = vmul.f32 %v1696_v16, %v498_v49  ;;  %vm2381_vm3 = vcmp.lt.f32.partialorder %v500_v48, 0.0004427343 }
 0x2ca   :  { %1713 = vpow2.f32 %v563_v40  ;;  %v2385_v9 = vmax.f32 %v1664_v57, %v1666_v58  ;;  %vm2387_vm4 = vcmp.lt.f32.partialorder %v525_v50, 0.0004427343  ;;  %v532_v17 = vadd.f32 1.0, %v531_v52 }
 0x2cb   :  { %1715 = vpow2.f32 %v571_v53  ;;  %v2391_v18 = vmax.f32 %v1665_v60, %v1667_v61  ;;  %v524_v22 = vmul.f32 %v1698_v28, %v523_v56  ;;  %vm2397_vm5 = vcmp.lt.f32.partialorder %v534_v59, 0.0004427343 }
 0x2cc   :  { %v591_v13 = vsub.f32 %v1664_v57, %v2385_v9  ;;  %v599_v16 = vsub.f32 %v1666_v58, %v2385_v9  ;;  %v533_v43 = vmul.f32 %v1700_v32, %v532_v17 }
 0x2cd   :  { %v1702_v62 = vpop.eup %1701  ;;  %v592_v31 = vsub.f32 %v1665_v60, %v2391_v18  ;;  %v600_v33 = vsub.f32 %v1667_v61, %v2391_v18 }
 0x2ce   :  { %v1704_v11 = vpop.eup %1703  ;;  %v487_v14 = vmul.f32 0.6931472, %v1702_v62  ;;  %v593_v1 = vmul.f32 1.442695, %v591_v13  ;;  %v601_v40 = vmul.f32 1.442695, %v599_v16 }
 0x2cf   :  { %v496_v19 = vmul.f32 0.6931472, %v1704_v11  ;;  %v1706_v23 = vpop.eup %1705  ;;  %v595_v45 = vmul.f32 1.442695, %v592_v31  ;;  %v603_v49 = vmul.f32 1.442695, %v600_v33 }
 0x2d0   :  { %v493_v27 = vsel %vm2377_vm2, %v490_v63, %v487_v14  ;;  %1717 = vpow2.f32 %v593_v1 }
 0x2d1   :  { %v1708_v36 = vpop.eup %1707  ;;  %v503_v28 = vadd.f32 %v493_v27, %v475_v21  ;;  %v502_v38 = vsel %vm2381_vm3, %v499_v2, %v496_v19  ;;  %1719 = vpow2.f32 %v601_v40 }
 0x2d2   :  { %v1710_v41 = vpop.eup %1709  ;;  %v504_v3 = vadd.f32 %v502_v38, %v476_v25  ;;  %v521_v42 = vmul.f32 0.6931472, %v1708_v36 }
 0x2d3   :  { %v1712_v46 = vpop.eup %1711  ;;  %v505_v48 = vsub.f32 %v2357_v20, %v503_v28  ;;  %v573_v0 = vadd.f32 %v1710_v41, %v1706_v23 }
 0x2d4   :  { %v1714_v37 = vpop.eup %1713  ;;  %v506_v21 = vsub.f32 %v2362_v24, %v504_v3  ;;  %v527_v50 = vsel %vm2387_vm4, %v524_v22, %v521_v42  ;;  %v530_v51 = vmul.f32 0.6931472, %v1712_v46 }
 0x2d5   :  { %v581_v39 = vadd.f32 %v2333_v5, %v505_v48  ;;  %v537_v25 = vadd.f32 %v527_v50, %v509_v29  ;;  %1721 = vlog2.f32 %v573_v0  ;;  %v613_v32 = vadd.f32 %v1664_v57, %v505_v48  ;;  %v1716_v52 = vpop.eup %1715 }
 0x2d6   :  { %v582_v20 = vadd.f32 %v2337_v7, %v506_v21  ;;  %v536_v53 = vsel %vm2397_vm5, %v533_v43, %v530_v51  ;;  %v614_v54 = vadd.f32 %v1665_v60, %v506_v21  ;;  %1723 = vpow2.f32 %v595_v45 }
 0x2d7   :  { %v539_v24 = vsub.f32 %v2367_v26, %v537_v25  ;;  %v538_v55 = vadd.f32 %v536_v53, %v510_v35  ;;  %v574_v56 = vadd.f32 %v1716_v52, %v1714_v37  ;;  %1725 = vpow2.f32 %v603_v49 }
 0x2d9   :  { %v585_v44 = vadd.f32 %v2335_v6, %v539_v24  ;;  %v540_v5 = vsub.f32 %v2372_v34, %v538_v55  ;;  %1727 = vlog2.f32 %v574_v56  ;;  %v617_v29 = vadd.f32 %v1666_v58, %v539_v24 }
 0x2da   :  { %v1718_v59 = vpop.eup %1717 }
 0x2db   :  { %v586_v7 = vadd.f32 %v2339_v8, %v540_v5  ;;  %v618_v57 = vadd.f32 %v1667_v61, %v540_v5  ;;  %v1720_v62 = vpop.eup %1719 }
 0x2dc   :  { %v605_v63 = vadd.f32 %v1720_v62, %v1718_v59 }
 0x2de   :  { %1729 = vlog2.f32 %v605_v63 }
 0x2df   :  { %v1722_v60 = vpop.eup %1721 }
 0x2e0   :  { %v1724_v2 = vpop.eup %1723  ;;  %v576_v26 = vmul.f32 0.6931472, %v1722_v60 }
 0x2e1   :  { %v1726_v4 = vpop.eup %1725 }
 0x2e2   :  { %v579_v47 = vadd.f32 %v576_v26, %v2343_v10  ;;  %v606_v35 = vadd.f32 %v1726_v4, %v1724_v2 }
 0x2e3   :  { %v1728_v11 = vpop.eup %1727 }
 0x2e4   :  { %v2426_v6 = vsub.f32 %v581_v39, %v579_v47  ;;  %v2428_v34 = vsub.f32 %v585_v44, %v579_v47  ;;  %v578_v58 = vmul.f32 0.6931472, %v1728_v11  ;;  %1731 = vlog2.f32 %v606_v35 }
 0x2e6   :  { %v663_v8 = vrot.slane %v2428_v34, 1  ;;  %v580_v61 = vadd.f32 %v578_v58, %v2347_v12  ;;  %v623_v27 = vrot.slane %v2426_v6, 1 }
 0x2e8   :  { %v667_v14 = vadd.f32 %v663_v8, %v2426_v6  ;;  %v2433_v15 = vsub.f32 %v582_v20, %v580_v61  ;;  %v2435_v17 = vsub.f32 %v586_v7, %v580_v61  ;;  %v1730_v19 = vpop.eup %1729 }
 0x2e9   :  { %v608_v22 = vmul.f32 0.6931472, %v1730_v19 }
 0x2ea   :  { %v664_v10 = vrot.slane %v2435_v17, 1  ;;  %v624_v33 = vrot.slane %v2433_v15, 1 }
 0x2eb   :  { %v611_v23 = vadd.f32 %v608_v22, %v2385_v9  ;;  %v627_v9 = vadd.f32 %v623_v27, %v2426_v6 }
 0x2ec   :  { %v2439_v13 = vadd.f32 %v664_v10, %v2433_v15 }
 0x2ed   :  { %v2443_v12 = vsub.f32 %v613_v32, %v611_v23  ;;  %v2445_v31 = vsub.f32 %v617_v29, %v611_v23 }
 0x2ee   :  { %v1732_v16 = vpop.eup %1731 }
 0x2ef   :  { %v610_v30 = vmul.f32 0.6931472, %v1732_v16  ;;  %v631_v28 = vrot.slane %v2443_v12, 1  ;;  %v671_v38 = vrot.slane %v2445_v31, 1  ;;  %v701_v1 = vadd.f32 %v623_v27, %v2443_v12 }
 0x2f0   :  { %v729_v40 = vadd.f32 %v663_v8, %v2443_v12 }
 0x2f1   :  { %v612_v36 = vadd.f32 %v610_v30, %v2391_v18  ;;  %v635_v41 = vadd.f32 %v631_v28, %v2428_v34  ;;  %v675_v3 = vadd.f32 %v671_v38, %v2428_v34  ;;  %v703_v42 = vadd.f32 %v631_v28, %v2445_v31 }
 0x2f2   :  { %v731_v43 = vadd.f32 %v671_v38, %v2445_v31  ;;  %v628_v18 = vadd.f32 %v624_v33, %v2433_v15 }
 0x2f3   :  { %v2459_v45 = vsub.f32 %v614_v54, %v612_v36  ;;  %v2461_v46 = vsub.f32 %v618_v57, %v612_v36  ;;  %v2463_v48 = vmax.f32 %v627_v9, %v635_v41  ;;  %v2465_v0 = vmax.f32 %v667_v14, %v675_v3 }
 0x2f4   :  { %v2467_v49 = vmax.f32 %v701_v1, %v703_v42  ;;  %v2469_v37 = vmax.f32 %v729_v40, %v731_v43 }
 0x2f5   :  { %v632_v21 = vrot.slane %v2459_v45, 1  ;;  %v672_v50 = vrot.slane %v2461_v46, 1  ;;  %v702_v51 = vadd.f32 %v624_v33, %v2459_v45  ;;  %v730_v39 = vadd.f32 %v664_v10, %v2459_v45 }
 0x2f6   :  { %v639_v25 = vsub.f32 %v627_v9, %v2463_v48  ;;  %v647_v32 = vsub.f32 %v635_v41, %v2463_v48  ;;  %v679_v52 = vsub.f32 %v667_v14, %v2465_v0  ;;  %v687_v20 = vsub.f32 %v675_v3, %v2465_v0 }
 0x2f7   :  { %v707_v53 = vsub.f32 %v701_v1, %v2467_v49  ;;  %v715_v54 = vsub.f32 %v703_v42, %v2467_v49  ;;  %v735_v24 = vsub.f32 %v729_v40, %v2469_v37  ;;  %v743_v55 = vsub.f32 %v731_v43, %v2469_v37 }
 0x2f8   :  { %v641_v56 = vmul.f32 1.442695, %v639_v25  ;;  %v649_v44 = vmul.f32 1.442695, %v647_v32  ;;  %v681_v5 = vmul.f32 1.442695, %v679_v52  ;;  %v636_v29 = vadd.f32 %v632_v21, %v2435_v17 }
 0x2f9   :  { %v689_v7 = vmul.f32 1.442695, %v687_v20  ;;  %v709_v57 = vmul.f32 1.442695, %v707_v53  ;;  %v676_v59 = vadd.f32 %v672_v50, %v2435_v17  ;;  %v717_v62 = vmul.f32 1.442695, %v715_v54 }
 0x2fa   :  { %1733 = vpow2.f32 %v641_v56  ;;  %v737_v60 = vmul.f32 1.442695, %v735_v24  ;;  %v2485_v63 = vmax.f32 %v628_v18, %v636_v29  ;;  %v704_v26 = vadd.f32 %v632_v21, %v2461_v46 }
 0x2fb   :  { %1735 = vpow2.f32 %v649_v44  ;;  %v2488_v2 = vmax.f32 %v2439_v13, %v676_v59  ;;  %v732_v4 = vadd.f32 %v672_v50, %v2461_v46  ;;  %v745_v47 = vmul.f32 1.442695, %v743_v55 }
 0x2fc   :  { %1737 = vpow2.f32 %v681_v5  ;;  %v640_v35 = vsub.f32 %v628_v18, %v2485_v63  ;;  %v648_v11 = vsub.f32 %v636_v29, %v2485_v63  ;;  %v2497_v61 = vmax.f32 %v702_v51, %v704_v26 }
 0x2fd   :  { %1739 = vpow2.f32 %v689_v7  ;;  %v680_v58 = vsub.f32 %v2439_v13, %v2488_v2  ;;  %v688_v8 = vsub.f32 %v676_v59, %v2488_v2  ;;  %v2499_v19 = vmax.f32 %v730_v39, %v732_v4 }
 0x2fe   :  { %1741 = vpow2.f32 %v709_v57  ;;  %v643_v14 = vmul.f32 1.442695, %v640_v35  ;;  %v651_v10 = vmul.f32 1.442695, %v648_v11  ;;  %v708_v16 = vsub.f32 %v702_v51, %v2497_v61 }
 0x2ff   :  { %1743 = vpow2.f32 %v717_v62  ;;  %v683_v22 = vmul.f32 1.442695, %v680_v58  ;;  %v716_v23 = vsub.f32 %v704_v26, %v2497_v61  ;;  %v736_v27 = vsub.f32 %v730_v39, %v2499_v19 }
 0x300   :  { %1745 = vpow2.f32 %v737_v60  ;;  %v744_v13 = vsub.f32 %v732_v4, %v2499_v19  ;;  %v691_v30 = vmul.f32 1.442695, %v688_v8  ;;  %v711_v33 = vmul.f32 1.442695, %v708_v16 }
 0x301   :  { %1747 = vpow2.f32 %v745_v47  ;;  %v719_v36 = vmul.f32 1.442695, %v716_v23  ;;  %v739_v1 = vmul.f32 1.442695, %v736_v27  ;;  %v757_v59 = vrot.slane %v2426_v6, 2 }
 0x302   :  { %1749 = vpow2.f32 %v643_v14  ;;  %v747_v3 = vmul.f32 1.442695, %v744_v13  ;;  %v793_v62 = vrot.slane %v2428_v34, 2  ;;  %v763_v47 = vrot.slane %v2443_v12, 2 }
 0x303   :  { %1751 = vpow2.f32 %v651_v10  ;;  %v799_v35 = vrot.slane %v2445_v31, 2 }
 0x304   :  { %v1734_v28 = vpop.eup %1733  ;;  %1753 = vpow2.f32 %v683_v22 }
 0x305   :  { %v1736_v38 = vpop.eup %1735  ;;  %1755 = vpow2.f32 %v691_v30  ;;  %v758_v30 = vrot.slane %v2433_v15, 2 }
 0x306   :  { %v1738_v40 = vpop.eup %1737  ;;  %v653_v9 = vadd.f32 %v1736_v38, %v1734_v28  ;;  %1757 = vpow2.f32 %v711_v33  ;;  %v794_v33 = vrot.slane %v2435_v17, 2 }
 0x307   :  { %v1740_v41 = vpop.eup %1739  ;;  %1759 = vpow2.f32 %v719_v36 }
 0x308   :  { %v1742_v42 = vpop.eup %1741  ;;  %1761 = vlog2.f32 %v653_v9  ;;  %v693_v43 = vadd.f32 %v1740_v41, %v1738_v40  ;;  %v800_v41 = vrot.slane %v2461_v46, 2 }
 0x309   :  { %v1744_v18 = vpop.eup %1743  ;;  %1763 = vpow2.f32 %v739_v1 }
 0x30a   :  { %v1746_v21 = vpop.eup %1745  ;;  %1765 = vlog2.f32 %v693_v43  ;;  %v721_v50 = vadd.f32 %v1744_v18, %v1742_v42 }
 0x30b   :  { %v1748_v51 = vpop.eup %1747  ;;  %1767 = vpow2.f32 %v747_v3 }
 0x30c   :  { %v1750_v39 = vpop.eup %1749  ;;  %1769 = vlog2.f32 %v721_v50  ;;  %v749_v25 = vadd.f32 %v1748_v51, %v1746_v21 }
 0x30d   :  { %v1752_v32 = vpop.eup %1751 }
 0x30e   :  { %v1754_v52 = vpop.eup %1753  ;;  %1771 = vlog2.f32 %v749_v25  ;;  %v654_v20 = vadd.f32 %v1752_v32, %v1750_v39 }
 0x30f   :  { %v1756_v53 = vpop.eup %1755 }
 0x310   :  { %v1758_v54 = vpop.eup %1757  ;;  %1773 = vlog2.f32 %v654_v20  ;;  %v694_v24 = vadd.f32 %v1756_v53, %v1754_v52 }
 0x311   :  { %v1760_v55 = vpop.eup %1759 }
 0x312   :  { %v1762_v56 = vpop.eup %1761  ;;  %1775 = vlog2.f32 %v694_v24  ;;  %v722_v44 = vadd.f32 %v1760_v55, %v1758_v54 }
 0x313   :  { %v1764_v5 = vpop.eup %1763  ;;  %v656_v29 = vmul.f32 0.6931472, %v1762_v56 }
 0x314   :  { %v1766_v7 = vpop.eup %1765  ;;  %1777 = vlog2.f32 %v722_v44 }
 0x315   :  { %v1768_v57 = vpop.eup %1767  ;;  %v659_v60 = vadd.f32 %v656_v29, %v2463_v48  ;;  %v696_v26 = vmul.f32 0.6931472, %v1766_v7 }
 0x316   :  { %v1770_v4 = vpop.eup %1769  ;;  %v750_v11 = vadd.f32 %v1768_v57, %v1764_v5 }
 0x317   :  { %v699_v58 = vadd.f32 %v696_v26, %v2465_v0  ;;  %v724_v8 = vmul.f32 0.6931472, %v1770_v4  ;;  %v761_v14 = vadd.f32 %v757_v59, %v659_v60  ;;  %v797_v10 = vadd.f32 %v793_v62, %v659_v60 }
 0x318   :  { %v1772_v22 = vpop.eup %1771  ;;  %1779 = vlog2.f32 %v750_v11 }
 0x319   :  { %v727_v16 = vadd.f32 %v724_v8, %v2467_v49  ;;  %v752_v23 = vmul.f32 0.6931472, %v1772_v22  ;;  %v767_v27 = vadd.f32 %v763_v47, %v699_v58  ;;  %v803_v13 = vadd.f32 %v799_v35, %v699_v58 }
 0x31a   :  { %v1774_v48 = vpop.eup %1773  ;;  %v764_v49 = vrot.slane %v2459_v45, 2 }
 0x31b   :  { %v755_v36 = vadd.f32 %v752_v23, %v2469_v37  ;;  %v2515_v28 = vmax.f32 %v761_v14, %v767_v27  ;;  %v2517_v0 = vmax.f32 %v797_v10, %v803_v13  ;;  %v829_v38 = vadd.f32 %v757_v59, %v727_v16 }
 0x31c   :  { %v1776_v1 = vpop.eup %1775  ;;  %v857_v40 = vadd.f32 %v793_v62, %v727_v16  ;;  %v658_v9 = vmul.f32 0.6931472, %v1774_v48 }
 0x31d   :  { %v771_v3 = vsub.f32 %v761_v14, %v2515_v28  ;;  %v779_v42 = vsub.f32 %v767_v27, %v2515_v28  ;;  %v807_v43 = vsub.f32 %v797_v10, %v2517_v0  ;;  %v815_v37 = vsub.f32 %v803_v13, %v2517_v0 }
 0x31e   :  { %v1778_v18 = vpop.eup %1777  ;;  %v831_v21 = vadd.f32 %v763_v47, %v755_v36  ;;  %v859_v50 = vadd.f32 %v799_v35, %v755_v36  ;;  %v660_v51 = vadd.f32 %v658_v9, %v2485_v63  ;;  %v698_v39 = vmul.f32 0.6931472, %v1776_v1 }
 0x31f   :  { %v773_v25 = vmul.f32 1.442695, %v771_v3  ;;  %v781_v32 = vmul.f32 1.442695, %v779_v42  ;;  %v809_v52 = vmul.f32 1.442695, %v807_v43 }
 0x320   :  { %v817_v20 = vmul.f32 1.442695, %v815_v37  ;;  %v2526_v53 = vmax.f32 %v829_v38, %v831_v21  ;;  %v2528_v54 = vmax.f32 %v857_v40, %v859_v50  ;;  %v700_v24 = vadd.f32 %v698_v39, %v2488_v2 }
 0x321   :  { %1781 = vpow2.f32 %v773_v25  ;;  %v726_v55 = vmul.f32 0.6931472, %v1778_v18  ;;  %v762_v56 = vadd.f32 %v758_v30, %v660_v51  ;;  %v798_v44 = vadd.f32 %v794_v33, %v660_v51 }
 0x322   :  { %v1780_v5 = vpop.eup %1779  ;;  %1783 = vpow2.f32 %v781_v32  ;;  %v835_v29 = vsub.f32 %v829_v38, %v2526_v53  ;;  %v843_v63 = vsub.f32 %v831_v21, %v2526_v53  ;;  %v863_v7 = vsub.f32 %v857_v40, %v2528_v54 }
 0x323   :  { %1785 = vpow2.f32 %v809_v52  ;;  %v871_v57 = vsub.f32 %v859_v50, %v2528_v54  ;;  %v728_v59 = vadd.f32 %v726_v55, %v2497_v61  ;;  %v754_v62 = vmul.f32 0.6931472, %v1780_v5 }
 0x324   :  { %1787 = vpow2.f32 %v817_v20  ;;  %v837_v2 = vmul.f32 1.442695, %v835_v29  ;;  %v845_v60 = vmul.f32 1.442695, %v843_v63  ;;  %v865_v26 = vmul.f32 1.442695, %v863_v7 }
 0x325   :  { %v873_v4 = vmul.f32 1.442695, %v871_v57  ;;  %v756_v47 = vadd.f32 %v754_v62, %v2499_v19  ;;  %v768_v35 = vadd.f32 %v764_v49, %v700_v24  ;;  %v804_v11 = vadd.f32 %v800_v41, %v700_v24 }
 0x326   :  { %1789 = vpow2.f32 %v837_v2  ;;  %v830_v58 = vadd.f32 %v758_v30, %v728_v59  ;;  %v858_v8 = vadd.f32 %v794_v33, %v728_v59  ;;  %v885_v62 = vrot.slane %v2426_v6, 3 }
 0x327   :  { %1791 = vpow2.f32 %v845_v60  ;;  %v2537_v14 = vmax.f32 %v762_v56, %v768_v35  ;;  %v2539_v10 = vmax.f32 %v798_v44, %v804_v11  ;;  %v832_v22 = vadd.f32 %v764_v49, %v756_v47 }
 0x328   :  { %1793 = vpow2.f32 %v865_v26  ;;  %v860_v61 = vadd.f32 %v800_v41, %v756_v47  ;;  %v921_v2 = vrot.slane %v2428_v34, 3  ;;  %v891_v47 = vrot.slane %v2443_v12, 3 }
 0x329   :  { %1795 = vpow2.f32 %v873_v4  ;;  %v772_v16 = vsub.f32 %v762_v56, %v2537_v14  ;;  %v780_v23 = vsub.f32 %v768_v35, %v2537_v14  ;;  %v808_v19 = vsub.f32 %v798_v44, %v2539_v10 }
 0x32a   :  { %v816_v27 = vsub.f32 %v804_v11, %v2539_v10  ;;  %v2545_v13 = vmax.f32 %v830_v58, %v832_v22  ;;  %v2547_v48 = vmax.f32 %v858_v8, %v860_v61 }
 0x32b   :  { %v1782_v30 = vpop.eup %1781  ;;  %v775_v33 = vmul.f32 1.442695, %v772_v16  ;;  %v783_v36 = vmul.f32 1.442695, %v780_v23  ;;  %v811_v1 = vmul.f32 1.442695, %v808_v19 }
 0x32c   :  { %v1784_v38 = vpop.eup %1783  ;;  %v836_v40 = vsub.f32 %v830_v58, %v2545_v13  ;;  %v844_v9 = vsub.f32 %v832_v22, %v2545_v13  ;;  %v864_v49 = vsub.f32 %v858_v8, %v2547_v48  ;;  %v872_v42 = vsub.f32 %v860_v61, %v2547_v48 }
 0x32d   :  { %v1786_v41 = vpop.eup %1785  ;;  %v785_v3 = vadd.f32 %v1784_v38, %v1782_v30  ;;  %1797 = vpow2.f32 %v775_v33  ;;  %v819_v37 = vmul.f32 1.442695, %v816_v27  ;;  %v927_v22 = vrot.slane %v2445_v31, 3 }
 0x32e   :  { %v1788_v43 = vpop.eup %1787  ;;  %1799 = vpow2.f32 %v783_v36  ;;  %v839_v21 = vmul.f32 1.442695, %v836_v40  ;;  %v847_v39 = vmul.f32 1.442695, %v844_v9  ;;  %v867_v20 = vmul.f32 1.442695, %v864_v49 }
 0x32f   :  { %1801 = vlog2.f32 %v785_v3  ;;  %v821_v18 = vadd.f32 %v1788_v43, %v1786_v41  ;;  %v875_v55 = vmul.f32 1.442695, %v872_v42 }
 0x330   :  { %v1790_v50 = vpop.eup %1789  ;;  %1803 = vpow2.f32 %v811_v1 }
 0x331   :  { %v1792_v51 = vpop.eup %1791  ;;  %1805 = vlog2.f32 %v821_v18 }
 0x332   :  { %v1794_v25 = vpop.eup %1793  ;;  %v849_v32 = vadd.f32 %v1792_v51, %v1790_v50  ;;  %1807 = vpow2.f32 %v819_v37 }
 0x333   :  { %v1796_v52 = vpop.eup %1795  ;;  %1809 = vpow2.f32 %v839_v21 }
 0x334   :  { %1811 = vlog2.f32 %v849_v32  ;;  %v877_v24 = vadd.f32 %v1796_v52, %v1794_v25 }
 0x335   :  { %1813 = vpow2.f32 %v847_v39 }
 0x336   :  { %1815 = vlog2.f32 %v877_v24  ;;  %v886_v24 = vrot.slane %v2433_v15, 3 }
 0x337   :  { %v1798_v56 = vpop.eup %1797  ;;  %1817 = vpow2.f32 %v867_v20 }
 0x338   :  { %v1800_v44 = vpop.eup %1799  ;;  %1819 = vpow2.f32 %v875_v55  ;;  %v922_v55 = vrot.slane %v2435_v17, 3 }
 0x339   :  { %v1802_v5 = vpop.eup %1801  ;;  %v786_v29 = vadd.f32 %v1800_v44, %v1798_v56 }
 0x33a   :  { %v1804_v63 = vpop.eup %1803  ;;  %v788_v7 = vmul.f32 0.6931472, %v1802_v5 }
 0x33b   :  { %v1806_v57 = vpop.eup %1805  ;;  %1821 = vlog2.f32 %v786_v29 }
 0x33c   :  { %v1808_v59 = vpop.eup %1807  ;;  %v791_v60 = vadd.f32 %v788_v7, %v2515_v28  ;;  %v824_v26 = vmul.f32 0.6931472, %v1806_v57 }
 0x33d   :  { %v1810_v4 = vpop.eup %1809  ;;  %v822_v35 = vadd.f32 %v1808_v59, %v1804_v63 }
 0x33e   :  { %v1812_v11 = vpop.eup %1811  ;;  %v827_v58 = vadd.f32 %v824_v26, %v2517_v0  ;;  %v925_v8 = vadd.f32 %v921_v2, %v791_v60  ;;  %v889_v61 = vadd.f32 %v885_v62, %v791_v60 }
 0x33f   :  { %v1814_v16 = vpop.eup %1813  ;;  %v852_v23 = vmul.f32 0.6931472, %v1812_v11  ;;  %1823 = vlog2.f32 %v822_v35 }
 0x340   :  { %v1816_v19 = vpop.eup %1815  ;;  %v895_v27 = vadd.f32 %v891_v47, %v827_v58  ;;  %v931_v30 = vadd.f32 %v927_v22, %v827_v58  ;;  %v850_v33 = vadd.f32 %v1814_v16, %v1810_v4 }
 0x341   :  { %v1818_v28 = vpop.eup %1817  ;;  %v855_v36 = vadd.f32 %v852_v23, %v2526_v53  ;;  %v880_v38 = vmul.f32 0.6931472, %v1816_v19 }
 0x342   :  { %v1820_v1 = vpop.eup %1819  ;;  %v2560_v40 = vmax.f32 %v925_v8, %v931_v30  ;;  %1825 = vlog2.f32 %v850_v33  ;;  %v2562_v0 = vmax.f32 %v889_v61, %v895_v27 }
 0x343   :  { %v883_v9 = vadd.f32 %v880_v38, %v2528_v54  ;;  %v985_v49 = vadd.f32 %v921_v2, %v855_v36  ;;  %v878_v41 = vadd.f32 %v1820_v1, %v1818_v28  ;;  %v957_v3 = vadd.f32 %v885_v62, %v855_v36 }
 0x344   :  { %v935_v42 = vsub.f32 %v925_v8, %v2560_v40  ;;  %v943_v43 = vsub.f32 %v931_v30, %v2560_v40  ;;  %v899_v37 = vsub.f32 %v889_v61, %v2562_v0  ;;  %v907_v53 = vsub.f32 %v895_v27, %v2562_v0 }
 0x345   :  { %v1822_v18 = vpop.eup %1821  ;;  %v959_v21 = vadd.f32 %v891_v47, %v883_v9  ;;  %v987_v50 = vadd.f32 %v927_v22, %v883_v9  ;;  %1827 = vlog2.f32 %v878_v41  ;;  %v928_v47 = vrot.slane %v2461_v46, 3 }
 0x346   :  { %v937_v51 = vmul.f32 1.442695, %v935_v42  ;;  %v945_v39 = vmul.f32 1.442695, %v943_v43  ;;  %v790_v25 = vmul.f32 0.6931472, %v1822_v18 }
 0x347   :  { %v2569_v32 = vmax.f32 %v985_v49, %v987_v50  ;;  %v901_v54 = vmul.f32 1.442695, %v899_v37  ;;  %v909_v52 = vmul.f32 1.442695, %v907_v53  ;;  %v2571_v20 = vmax.f32 %v957_v3, %v959_v21 }
 0x348   :  { %1829 = vpow2.f32 %v937_v51  ;;  %v792_v56 = vadd.f32 %v790_v25, %v2537_v14  ;;  %v892_v14 = vrot.slane %v2459_v45, 3 }
 0x349   :  { %v1824_v44 = vpop.eup %1823  ;;  %1831 = vpow2.f32 %v945_v39  ;;  %v991_v5 = vsub.f32 %v985_v49, %v2569_v32  ;;  %v999_v29 = vsub.f32 %v987_v50, %v2569_v32  ;;  %v963_v63 = vsub.f32 %v957_v3, %v2571_v20 }
 0x34a   :  { %v826_v7 = vmul.f32 0.6931472, %v1824_v44  ;;  %v926_v57 = vadd.f32 %v922_v55, %v792_v56  ;;  %v890_v59 = vadd.f32 %v886_v24, %v792_v56  ;;  %1833 = vpow2.f32 %v901_v54 }
 0x34b   :  { %v993_v62 = vmul.f32 1.442695, %v991_v5  ;;  %v1001_v2 = vmul.f32 1.442695, %v999_v29  ;;  %1835 = vpow2.f32 %v909_v52  ;;  %v965_v60 = vmul.f32 1.442695, %v963_v63 }
 0x34c   :  { %v1826_v26 = vpop.eup %1825  ;;  %v828_v4 = vadd.f32 %v826_v7, %v2539_v10  ;;  %v971_v35 = vsub.f32 %v959_v21, %v2571_v20 }
 0x34d   :  { %1837 = vpow2.f32 %v993_v62  ;;  %v854_v11 = vmul.f32 0.6931472, %v1826_v26 }
 0x34e   :  { %1839 = vpow2.f32 %v1001_v2  ;;  %v896_v58 = vadd.f32 %v892_v14, %v828_v4  ;;  %v932_v8 = vadd.f32 %v928_v47, %v828_v4  ;;  %v973_v22 = vmul.f32 1.442695, %v971_v35 }
 0x34f   :  { %v1828_v61 = vpop.eup %1827  ;;  %v856_v16 = vadd.f32 %v854_v11, %v2545_v13  ;;  %1841 = vpow2.f32 %v965_v60 }
 0x350   :  { %v882_v23 = vmul.f32 0.6931472, %v1828_v61  ;;  %v2584_v19 = vmax.f32 %v926_v57, %v932_v8  ;;  %v2586_v10 = vmax.f32 %v890_v59, %v896_v58  ;;  %1843 = vpow2.f32 %v973_v22 }
 0x351   :  { %v986_v27 = vadd.f32 %v922_v55, %v856_v16  ;;  %v958_v30 = vadd.f32 %v886_v24, %v856_v16  ;;  %v1049_v61 = vrot.slane %v2428_v34, 4 }
 0x352   :  { %v1830_v33 = vpop.eup %1829  ;;  %v884_v28 = vadd.f32 %v882_v23, %v2547_v48  ;;  %v936_v36 = vsub.f32 %v926_v57, %v2584_v19  ;;  %v944_v38 = vsub.f32 %v932_v8, %v2584_v19  ;;  %v900_v1 = vsub.f32 %v890_v59, %v2586_v10 }
 0x353   :  { %v1832_v9 = vpop.eup %1831  ;;  %v908_v13 = vsub.f32 %v896_v58, %v2586_v10  ;;  %v1013_v23 = vrot.slane %v2426_v6, 4 }
 0x354   :  { %v1834_v49 = vpop.eup %1833  ;;  %v939_v41 = vmul.f32 1.442695, %v936_v36  ;;  %v947_v3 = vmul.f32 1.442695, %v944_v38  ;;  %v960_v42 = vadd.f32 %v892_v14, %v884_v28  ;;  %v988_v43 = vadd.f32 %v928_v47, %v884_v28 }
 0x355   :  { %v1836_v37 = vpop.eup %1835  ;;  %v903_v53 = vmul.f32 1.442695, %v900_v1  ;;  %v911_v18 = vmul.f32 1.442695, %v908_v13  ;;  %v949_v21 = vadd.f32 %v1832_v9, %v1830_v33  ;;  %v1019_v36 = vrot.slane %v2443_v12, 4 }
 0x356   :  { %1845 = vpow2.f32 %v939_v41  ;;  %v2593_v48 = vmax.f32 %v986_v27, %v988_v43  ;;  %v913_v50 = vadd.f32 %v1836_v37, %v1834_v49  ;;  %v2595_v51 = vmax.f32 %v958_v30, %v960_v42 }
 0x357   :  { %v1838_v39 = vpop.eup %1837  ;;  %1847 = vpow2.f32 %v947_v3 }
 0x358   :  { %v1840_v25 = vpop.eup %1839  ;;  %v992_v54 = vsub.f32 %v986_v27, %v2593_v48  ;;  %v1000_v52 = vsub.f32 %v988_v43, %v2593_v48  ;;  %1849 = vpow2.f32 %v903_v53  ;;  %v964_v24 = vsub.f32 %v958_v30, %v2595_v51 }
 0x359   :  { %v1842_v55 = vpop.eup %1841  ;;  %1851 = vpow2.f32 %v911_v18  ;;  %v972_v56 = vsub.f32 %v960_v42, %v2595_v51  ;;  %v1005_v44 = vadd.f32 %v1840_v25, %v1838_v39  ;;  %v1055_v30 = vrot.slane %v2445_v31, 4 }
 0x35a   :  { %v1844_v5 = vpop.eup %1843  ;;  %v995_v29 = vmul.f32 1.442695, %v992_v54  ;;  %v1003_v63 = vmul.f32 1.442695, %v1000_v52  ;;  %1853 = vlog2.f32 %v913_v50  ;;  %v967_v7 = vmul.f32 1.442695, %v964_v24 }
 0x35b   :  { %1855 = vlog2.f32 %v949_v21  ;;  %v975_v57 = vmul.f32 1.442695, %v972_v56  ;;  %v977_v59 = vadd.f32 %v1844_v5, %v1842_v55  ;;  %v1020_v21 = vrot.slane %v2459_v45, 4 }
 0x35c   :  { %1857 = vpow2.f32 %v995_v29 }
 0x35d   :  { %1859 = vpow2.f32 %v1003_v63 }
 0x35e   :  { %1861 = vpow2.f32 %v967_v7 }
 0x35f   :  { %1863 = vpow2.f32 %v975_v57 }
 0x360   :  { %v1846_v62 = vpop.eup %1845  ;;  %1865 = vlog2.f32 %v977_v59 }
 0x361   :  { %v1848_v2 = vpop.eup %1847  ;;  %1867 = vlog2.f32 %v1005_v44 }
 0x362   :  { %v1850_v60 = vpop.eup %1849  ;;  %v950_v26 = vadd.f32 %v1848_v2, %v1846_v62  ;;  %v1050_v2 = vrot.slane %v2435_v17, 4 }
 0x363   :  { %v1852_v4 = vpop.eup %1851 }
 0x364   :  { %v1854_v14 = vpop.eup %1853  ;;  %v914_v47 = vadd.f32 %v1852_v4, %v1850_v60  ;;  %1869 = vlog2.f32 %v950_v26  ;;  %v1014_v60 = vrot.slane %v2433_v15, 4 }
 0x365   :  { %v1856_v35 = vpop.eup %1855  ;;  %v916_v11 = vmul.f32 0.6931472, %v1854_v14 }
 0x366   :  { %v1858_v58 = vpop.eup %1857  ;;  %1871 = vlog2.f32 %v914_v47  ;;  %v952_v8 = vmul.f32 0.6931472, %v1856_v35 }
 0x367   :  { %v1860_v22 = vpop.eup %1859  ;;  %v919_v16 = vadd.f32 %v916_v11, %v2562_v0 }
 0x368   :  { %v1862_v27 = vpop.eup %1861  ;;  %v955_v33 = vadd.f32 %v952_v8, %v2560_v40  ;;  %v1006_v28 = vadd.f32 %v1860_v22, %v1858_v58  ;;  %v1056_v40 = vrot.slane %v2461_v46, 4 }
 0x369   :  { %v1864_v38 = vpop.eup %1863  ;;  %v1017_v1 = vadd.f32 %v1013_v23, %v919_v16  ;;  %v1053_v9 = vadd.f32 %v1049_v61, %v919_v16 }
 0x36a   :  { %v1866_v13 = vpop.eup %1865  ;;  %v978_v49 = vadd.f32 %v1864_v38, %v1862_v27  ;;  %1873 = vlog2.f32 %v1006_v28  ;;  %v1023_v41 = vadd.f32 %v1019_v36, %v955_v33  ;;  %v1059_v3 = vadd.f32 %v1055_v30, %v955_v33 }
 0x36b   :  { %v1868_v42 = vpop.eup %1867  ;;  %v980_v0 = vmul.f32 0.6931472, %v1866_v13 }
 0x36c   :  { %1875 = vlog2.f32 %v978_v49  ;;  %v1008_v43 = vmul.f32 0.6931472, %v1868_v42  ;;  %v2607_v37 = vmax.f32 %v1017_v1, %v1023_v41  ;;  %v2609_v53 = vmax.f32 %v1053_v9, %v1059_v3 }
 0x36d   :  { %v983_v18 = vadd.f32 %v980_v0, %v2571_v20 }
 0x36e   :  { %v1870_v50 = vpop.eup %1869  ;;  %v1011_v39 = vadd.f32 %v1008_v43, %v2569_v32  ;;  %v1027_v25 = vsub.f32 %v1017_v1, %v2607_v37  ;;  %v1035_v54 = vsub.f32 %v1023_v41, %v2607_v37  ;;  %v1063_v52 = vsub.f32 %v1053_v9, %v2609_v53 }
 0x36f   :  { %v954_v24 = vmul.f32 0.6931472, %v1870_v50  ;;  %v1071_v55 = vsub.f32 %v1059_v3, %v2609_v53  ;;  %v1085_v56 = vadd.f32 %v1013_v23, %v983_v18  ;;  %v1113_v44 = vadd.f32 %v1049_v61, %v983_v18 }
 0x370   :  { %v1872_v5 = vpop.eup %1871  ;;  %v1029_v29 = vmul.f32 1.442695, %v1027_v25  ;;  %v1037_v63 = vmul.f32 1.442695, %v1035_v54  ;;  %v1065_v20 = vmul.f32 1.442695, %v1063_v52  ;;  %v1087_v7 = vadd.f32 %v1019_v36, %v1011_v39 }
 0x371   :  { %v918_v57 = vmul.f32 0.6931472, %v1872_v5  ;;  %v956_v59 = vadd.f32 %v954_v24, %v2584_v19  ;;  %v1073_v32 = vmul.f32 1.442695, %v1071_v55  ;;  %v2620_v62 = vadd.f32 %v1055_v30, %v1011_v39 }
 0x372   :  { %1877 = vpow2.f32 %v1029_v29  ;;  %v2624_v26 = vmax.f32 %v1085_v56, %v1087_v7 }
 0x373   :  { %v920_v4 = vadd.f32 %v918_v57, %v2586_v10  ;;  %v1024_v14 = vadd.f32 %v1020_v21, %v956_v59  ;;  %1879 = vpow2.f32 %v1037_v63  ;;  %v1060_v47 = vadd.f32 %v1056_v40, %v956_v59 }
 0x374   :  { %v1874_v35 = vpop.eup %1873  ;;  %1881 = vpow2.f32 %v1065_v20  ;;  %v1091_v11 = vsub.f32 %v1085_v56, %v2624_v26  ;;  %v1099_v19 = vsub.f32 %v1087_v7, %v2624_v26  ;;  %v2630_v58 = vmax.f32 %v1113_v44, %v2620_v62 }
 0x375   :  { %v1010_v8 = vmul.f32 0.6931472, %v1874_v35  ;;  %v1018_v22 = vadd.f32 %v1014_v60, %v920_v4  ;;  %v1054_v61 = vadd.f32 %v1050_v2, %v920_v4  ;;  %1883 = vpow2.f32 %v1073_v32 }
 0x376   :  { %v1876_v16 = vpop.eup %1875  ;;  %v1093_v23 = vmul.f32 1.442695, %v1091_v11  ;;  %v1101_v27 = vmul.f32 1.442695, %v1099_v19  ;;  %v1119_v10 = vsub.f32 %v1113_v44, %v2630_v58  ;;  %v1127_v30 = vsub.f32 %v2620_v62, %v2630_v58 }
 0x377   :  { %v982_v33 = vmul.f32 0.6931472, %v1876_v16  ;;  %v1012_v28 = vadd.f32 %v1010_v8, %v2593_v48  ;;  %v2636_v36 = vmax.f32 %v1018_v22, %v1024_v14  ;;  %v2638_v38 = vmax.f32 %v1054_v61, %v1060_v47 }
 0x378   :  { %1885 = vpow2.f32 %v1093_v23  ;;  %v1121_v1 = vmul.f32 1.442695, %v1119_v10  ;;  %v1129_v32 = vmul.f32 1.442695, %v1127_v30  ;;  %v1141_v30 = vrot.slane %v2426_v6, 5 }
 0x379   :  { %v984_v9 = vadd.f32 %v982_v33, %v2595_v51  ;;  %v1028_v13 = vsub.f32 %v1018_v22, %v2636_v36  ;;  %v1036_v49 = vsub.f32 %v1024_v14, %v2636_v36  ;;  %v1064_v41 = vsub.f32 %v1054_v61, %v2638_v38 }
 0x37a   :  { %v1072_v3 = vsub.f32 %v1060_v47, %v2638_v38  ;;  %v1088_v42 = vadd.f32 %v1020_v21, %v1012_v28  ;;  %1887 = vpow2.f32 %v1101_v27  ;;  %v1116_v0 = vadd.f32 %v1056_v40, %v1012_v28 }
 0x37b   :  { %v1031_v48 = vmul.f32 1.442695, %v1028_v13  ;;  %v1039_v43 = vmul.f32 1.442695, %v1036_v49  ;;  %v1067_v18 = vmul.f32 1.442695, %v1064_v41  ;;  %v1086_v50 = vadd.f32 %v1014_v60, %v984_v9 }
 0x37c   :  { %v1878_v39 = vpop.eup %1877  ;;  %v1114_v25 = vadd.f32 %v1050_v2, %v984_v9  ;;  %1889 = vpow2.f32 %v1121_v1  ;;  %v1075_v51 = vmul.f32 1.442695, %v1072_v3  ;;  %v1177_v33 = vrot.slane %v2428_v34, 5 }
 0x37d   :  { %v1880_v54 = vpop.eup %1879  ;;  %1891 = vpow2.f32 %v1031_v48  ;;  %v2645_v52 = vmax.f32 %v1086_v50, %v1088_v42  ;;  %v1147_v1 = vrot.slane %v2443_v12, 5  ;;  %v1183_v9 = vrot.slane %v2445_v31, 5 }
 0x37e   :  { %v1882_v24 = vpop.eup %1881  ;;  %1893 = vpow2.f32 %v1039_v43  ;;  %v1041_v55 = vadd.f32 %v1880_v54, %v1878_v39  ;;  %v2647_v56 = vmax.f32 %v1114_v25, %v1116_v0 }
 0x37f   :  { %v1884_v21 = vpop.eup %1883  ;;  %1895 = vpow2.f32 %v1067_v18  ;;  %v1092_v40 = vsub.f32 %v1086_v50, %v2645_v52  ;;  %v1100_v44 = vsub.f32 %v1088_v42, %v2645_v52 }
 0x380   :  { %1897 = vlog2.f32 %v1041_v55  ;;  %v1077_v5 = vadd.f32 %v1884_v21, %v1882_v24  ;;  %v1120_v29 = vsub.f32 %v1114_v25, %v2647_v56  ;;  %v1128_v63 = vsub.f32 %v1116_v0, %v2647_v56 }
 0x381   :  { %1899 = vpow2.f32 %v1075_v51  ;;  %v1095_v20 = vmul.f32 1.442695, %v1092_v40  ;;  %v1103_v7 = vmul.f32 1.442695, %v1100_v44 }
 0x382   :  { %v1886_v57 = vpop.eup %1885  ;;  %1901 = vlog2.f32 %v1077_v5  ;;  %v1123_v59 = vmul.f32 1.442695, %v1120_v29  ;;  %v1131_v2 = vmul.f32 1.442695, %v1128_v63 }
 0x383   :  { %1903 = vpow2.f32 %v1095_v20 }
 0x384   :  { %v1888_v62 = vpop.eup %1887  ;;  %1905 = vpow2.f32 %v1103_v7 }
 0x385   :  { %v1105_v60 = vadd.f32 %v1888_v62, %v1886_v57  ;;  %1907 = vpow2.f32 %v1123_v59  ;;  %v1178_v62 = vrot.slane %v2435_v17, 5 }
 0x386   :  { %v1890_v4 = vpop.eup %1889  ;;  %1909 = vpow2.f32 %v1129_v32  ;;  %v1142_v32 = vrot.slane %v2433_v15, 5 }
 0x387   :  { %v1892_v14 = vpop.eup %1891  ;;  %1911 = vlog2.f32 %v1105_v60 }
 0x388   :  { %v1894_v47 = vpop.eup %1893  ;;  %1913 = vpow2.f32 %v1131_v2 }
 0x389   :  { %v1896_v35 = vpop.eup %1895  ;;  %v1042_v11 = vadd.f32 %v1894_v47, %v1892_v14 }
 0x38a   :  { %v1898_v19 = vpop.eup %1897 }
 0x38b   :  { %v1900_v8 = vpop.eup %1899  ;;  %v1044_v22 = vmul.f32 0.6931472, %v1898_v19  ;;  %1915 = vlog2.f32 %v1042_v11  ;;  %v1148_v11 = vrot.slane %v2459_v45, 5  ;;  %v1184_v19 = vrot.slane %v2461_v46, 5 }
 0x38c   :  { %v1902_v61 = vpop.eup %1901  ;;  %v1078_v16 = vadd.f32 %v1900_v8, %v1896_v35 }
 0x38d   :  { %v1904_v23 = vpop.eup %1903  ;;  %v1047_v27 = vadd.f32 %v1044_v22, %v2607_v37  ;;  %v1080_v10 = vmul.f32 0.6931472, %v1902_v61 }
 0x38e   :  { %v1906_v28 = vpop.eup %1905  ;;  %1917 = vlog2.f32 %v1078_v16 }
 0x38f   :  { %v1908_v13 = vpop.eup %1907  ;;  %v1083_v49 = vadd.f32 %v1080_v10, %v2609_v53  ;;  %v1106_v41 = vadd.f32 %v1906_v28, %v1904_v23  ;;  %v1145_v3 = vadd.f32 %v1141_v30, %v1047_v27  ;;  %v1181_v42 = vadd.f32 %v1177_v33, %v1047_v27 }
 0x390   :  { %v1910_v0 = vpop.eup %1909 }
 0x391   :  { %v1912_v48 = vpop.eup %1911  ;;  %1919 = vlog2.f32 %v1106_v41  ;;  %v1133_v37 = vadd.f32 %v1910_v0, %v1890_v4  ;;  %v1151_v43 = vadd.f32 %v1147_v1, %v1083_v49  ;;  %v1187_v18 = vadd.f32 %v1183_v9, %v1083_v49 }
 0x392   :  { %v1914_v50 = vpop.eup %1913  ;;  %v1108_v39 = vmul.f32 0.6931472, %v1912_v48 }
 0x393   :  { %v1134_v25 = vadd.f32 %v1914_v50, %v1908_v13  ;;  %1921 = vlog2.f32 %v1133_v37  ;;  %v2663_v54 = vmax.f32 %v1145_v3, %v1151_v43  ;;  %v2665_v53 = vmax.f32 %v1181_v42, %v1187_v18 }
 0x394   :  { %v1111_v51 = vadd.f32 %v1108_v39, %v2624_v26 }
 0x395   :  { %v1916_v24 = vpop.eup %1915  ;;  %1923 = vlog2.f32 %v1134_v25  ;;  %v1155_v55 = vsub.f32 %v1145_v3, %v2663_v54  ;;  %v1163_v21 = vsub.f32 %v1151_v43, %v2663_v54  ;;  %v1191_v40 = vsub.f32 %v1181_v42, %v2665_v53 }
 0x396   :  { %v1046_v44 = vmul.f32 0.6931472, %v1916_v24  ;;  %v1199_v5 = vsub.f32 %v1187_v18, %v2665_v53  ;;  %v2672_v29 = vadd.f32 %v1141_v30, %v1111_v51  ;;  %v2674_v63 = vadd.f32 %v1177_v33, %v1111_v51 }
 0x397   :  { %v1157_v20 = vmul.f32 1.442695, %v1155_v55  ;;  %v1165_v7 = vmul.f32 1.442695, %v1163_v21  ;;  %v1193_v57 = vmul.f32 1.442695, %v1191_v40 }
 0x398   :  { %v1918_v59 = vpop.eup %1917  ;;  %v1048_v26 = vadd.f32 %v1046_v44, %v2636_v36  ;;  %v1201_v2 = vmul.f32 1.442695, %v1199_v5 }
 0x399   :  { %v1082_v60 = vmul.f32 0.6931472, %v1918_v59  ;;  %1925 = vpow2.f32 %v1157_v20 }
 0x39a   :  { %v1146_v4 = vadd.f32 %v1142_v32, %v1048_v26  ;;  %1927 = vpow2.f32 %v1165_v7  ;;  %v1182_v14 = vadd.f32 %v1178_v62, %v1048_v26 }
 0x39b   :  { %v1920_v47 = vpop.eup %1919  ;;  %v1084_v35 = vadd.f32 %v1082_v60, %v2638_v38  ;;  %1929 = vpow2.f32 %v1193_v57 }
 0x39c   :  { %v1110_v8 = vmul.f32 0.6931472, %v1920_v47  ;;  %1931 = vpow2.f32 %v1201_v2 }
 0x39d   :  { %v1922_v36 = vpop.eup %1921  ;;  %v1152_v22 = vadd.f32 %v1148_v11, %v1084_v35  ;;  %v1188_v61 = vadd.f32 %v1184_v19, %v1084_v35 }
 0x39e   :  { %v1112_v16 = vadd.f32 %v1110_v8, %v2645_v52  ;;  %v1136_v23 = vmul.f32 0.6931472, %v1922_v36 }
 0x39f   :  { %v1924_v27 = vpop.eup %1923  ;;  %v2683_v10 = vmax.f32 %v1146_v4, %v1152_v22  ;;  %v2685_v30 = vmax.f32 %v1182_v14, %v1188_v61 }
 0x3a0   :  { %v1138_v33 = vmul.f32 0.6931472, %v1924_v27  ;;  %v1139_v38 = vadd.f32 %v1136_v23, %v2630_v58  ;;  %v1214_v28 = vadd.f32 %v1142_v32, %v1112_v16  ;;  %v1242_v13 = vadd.f32 %v1178_v62, %v1112_v16 }
 0x3a1   :  { %v1156_v49 = vsub.f32 %v1146_v4, %v2683_v10  ;;  %v1164_v41 = vsub.f32 %v1152_v22, %v2683_v10  ;;  %v1192_v3 = vsub.f32 %v1182_v14, %v2685_v30  ;;  %v1200_v42 = vsub.f32 %v1188_v61, %v2685_v30 }
 0x3a2   :  { %v1140_v52 = vadd.f32 %v1138_v33, %v2647_v56  ;;  %v1215_v0 = vadd.f32 %v1147_v1, %v1139_v38  ;;  %v1243_v48 = vadd.f32 %v1183_v9, %v1139_v38  ;;  %v1269_v38 = vrot.slane %v2426_v6, 6 }
 0x3a3   :  { %v1926_v37 = vpop.eup %1925  ;;  %v1159_v58 = vmul.f32 1.442695, %v1156_v49  ;;  %v1167_v43 = vmul.f32 1.442695, %v1164_v41  ;;  %v1195_v50 = vmul.f32 1.442695, %v1192_v3 }
 0x3a4   :  { %v1928_v18 = vpop.eup %1927  ;;  %v1216_v39 = vadd.f32 %v1148_v11, %v1140_v52  ;;  %v2698_v25 = vmax.f32 %v2672_v29, %v1215_v0  ;;  %v1244_v51 = vadd.f32 %v1184_v19, %v1140_v52  ;;  %v1203_v56 = vmul.f32 1.442695, %v1200_v42 }
 0x3a5   :  { %v1930_v24 = vpop.eup %1929  ;;  %1933 = vpow2.f32 %v1159_v58  ;;  %v1169_v55 = vadd.f32 %v1928_v18, %v1926_v37  ;;  %v2701_v21 = vmax.f32 %v2674_v63, %v1243_v48 }
 0x3a6   :  { %v1932_v1 = vpop.eup %1931  ;;  %1935 = vpow2.f32 %v1167_v43  ;;  %v2703_v9 = vmax.f32 %v1214_v28, %v1216_v39  ;;  %v1219_v40 = vsub.f32 %v2672_v29, %v2698_v25  ;;  %v1227_v44 = vsub.f32 %v1215_v0, %v2698_v25 }
 0x3a7   :  { %1937 = vlog2.f32 %v1169_v55  ;;  %v1205_v5 = vadd.f32 %v1932_v1, %v1930_v24  ;;  %v2708_v20 = vmax.f32 %v1242_v13, %v1244_v51  ;;  %v1247_v7 = vsub.f32 %v2674_v63, %v2701_v21 }
 0x3a8   :  { %1939 = vpow2.f32 %v1195_v50  ;;  %v1220_v57 = vsub.f32 %v1214_v28, %v2703_v9  ;;  %v1221_v59 = vmul.f32 1.442695, %v1219_v40  ;;  %v1228_v26 = vsub.f32 %v1216_v39, %v2703_v9 }
 0x3a9   :  { %1941 = vpow2.f32 %v1203_v56  ;;  %v1229_v32 = vmul.f32 1.442695, %v1227_v44  ;;  %v1248_v62 = vsub.f32 %v1242_v13, %v2708_v20  ;;  %v1255_v60 = vsub.f32 %v1243_v48, %v2701_v21 }
 0x3aa   :  { %1943 = vlog2.f32 %v1205_v5  ;;  %v1223_v29 = vmul.f32 1.442695, %v1220_v57  ;;  %v1231_v2 = vmul.f32 1.442695, %v1228_v26  ;;  %v1249_v4 = vmul.f32 1.442695, %v1247_v7 }
 0x3ab   :  { %1945 = vpow2.f32 %v1221_v59  ;;  %v1256_v14 = vsub.f32 %v1244_v51, %v2708_v20  ;;  %v1251_v63 = vmul.f32 1.442695, %v1248_v62  ;;  %v1257_v47 = vmul.f32 1.442695, %v1255_v60 }
 0x3ac   :  { %1947 = vpow2.f32 %v1223_v29  ;;  %v1305_v28 = vrot.slane %v2428_v34, 6  ;;  %v1311_v48 = vrot.slane %v2445_v31, 6 }
 0x3ad   :  { %1949 = vpow2.f32 %v1229_v32  ;;  %v1259_v35 = vmul.f32 1.442695, %v1256_v14  ;;  %v1306_v14 = vrot.slane %v2435_v17, 6 }
 0x3ae   :  { %1951 = vpow2.f32 %v1231_v2 }
 0x3af   :  { %v1934_v11 = vpop.eup %1933  ;;  %1953 = vpow2.f32 %v1249_v4  ;;  %v1270_v4 = vrot.slane %v2433_v15, 6 }
 0x3b0   :  { %v1936_v19 = vpop.eup %1935  ;;  %1955 = vpow2.f32 %v1251_v63 }
 0x3b1   :  { %v1938_v8 = vpop.eup %1937  ;;  %v1170_v36 = vadd.f32 %v1936_v19, %v1934_v11  ;;  %1957 = vpow2.f32 %v1257_v47 }
 0x3b2   :  { %v1940_v22 = vpop.eup %1939  ;;  %v1172_v61 = vmul.f32 0.6931472, %v1938_v8  ;;  %1959 = vpow2.f32 %v1259_v35  ;;  %v1276_v8 = vrot.slane %v2459_v45, 6 }
 0x3b3   :  { %v1942_v16 = vpop.eup %1941  ;;  %1961 = vlog2.f32 %v1170_v36  ;;  %v1312_v36 = vrot.slane %v2461_v46, 6 }
 0x3b4   :  { %v1944_v23 = vpop.eup %1943  ;;  %v1175_v27 = vadd.f32 %v1172_v61, %v2663_v54  ;;  %v1206_v33 = vadd.f32 %v1942_v16, %v1940_v22  ;;  %v1275_v54 = vrot.slane %v2443_v12, 6 }
 0x3b5   :  { %v1946_v13 = vpop.eup %1945  ;;  %v1208_v49 = vmul.f32 0.6931472, %v1944_v23 }
 0x3b6   :  { %v1948_v41 = vpop.eup %1947  ;;  %1963 = vlog2.f32 %v1206_v33  ;;  %v1273_v3 = vadd.f32 %v1269_v38, %v1175_v27  ;;  %v1309_v42 = vadd.f32 %v1305_v28, %v1175_v27 }
 0x3b7   :  { %v1950_v52 = vpop.eup %1949  ;;  %v1211_v0 = vadd.f32 %v1208_v49, %v2665_v53 }
 0x3b8   :  { %v1952_v37 = vpop.eup %1951  ;;  %v1233_v58 = vadd.f32 %v1950_v52, %v1946_v13 }
 0x3b9   :  { %v1954_v43 = vpop.eup %1953  ;;  %v1234_v18 = vadd.f32 %v1952_v37, %v1948_v41  ;;  %v1279_v50 = vadd.f32 %v1275_v54, %v1211_v0  ;;  %v1315_v39 = vadd.f32 %v1311_v48, %v1211_v0 }
 0x3ba   :  { %v1956_v51 = vpop.eup %1955  ;;  %1965 = vlog2.f32 %v1233_v58 }
 0x3bb   :  { %v1958_v24 = vpop.eup %1957  ;;  %1967 = vlog2.f32 %v1234_v18  ;;  %v2731_v55 = vmax.f32 %v1273_v3, %v1279_v50  ;;  %v2733_v53 = vmax.f32 %v1309_v42, %v1315_v39 }
 0x3bc   :  { %v1960_v56 = vpop.eup %1959  ;;  %v1261_v1 = vadd.f32 %v1958_v24, %v1954_v43 }
 0x3bd   :  { %v1962_v40 = vpop.eup %1961  ;;  %v1262_v44 = vadd.f32 %v1960_v56, %v1956_v51  ;;  %v1283_v5 = vsub.f32 %v1273_v3, %v2731_v55  ;;  %v1291_v7 = vsub.f32 %v1279_v50, %v2731_v55  ;;  %v1319_v57 = vsub.f32 %v1309_v42, %v2733_v53 }
 0x3be   :  { %v1174_v59 = vmul.f32 0.6931472, %v1962_v40  ;;  %1969 = vlog2.f32 %v1261_v1  ;;  %v1327_v26 = vsub.f32 %v1315_v39, %v2733_v53 }
 0x3bf   :  { %1971 = vlog2.f32 %v1262_v44  ;;  %v1285_v32 = vmul.f32 1.442695, %v1283_v5  ;;  %v1293_v62 = vmul.f32 1.442695, %v1291_v7  ;;  %v1321_v29 = vmul.f32 1.442695, %v1319_v57 }
 0x3c0   :  { %v1964_v2 = vpop.eup %1963  ;;  %v1176_v60 = vadd.f32 %v1174_v59, %v2683_v10  ;;  %v1329_v63 = vmul.f32 1.442695, %v1327_v26 }
 0x3c1   :  { %v1210_v47 = vmul.f32 0.6931472, %v1964_v2  ;;  %1973 = vpow2.f32 %v1285_v32 }
 0x3c2   :  { %v1274_v35 = vadd.f32 %v1270_v4, %v1176_v60  ;;  %1975 = vpow2.f32 %v1293_v62  ;;  %v1310_v11 = vadd.f32 %v1306_v14, %v1176_v60 }
 0x3c3   :  { %v1212_v19 = vadd.f32 %v1210_v47, %v2685_v30  ;;  %1977 = vpow2.f32 %v1321_v29 }
 0x3c4   :  { %v1966_v22 = vpop.eup %1965  ;;  %1979 = vpow2.f32 %v1329_v63 }
 0x3c5   :  { %v1968_v10 = vpop.eup %1967  ;;  %v1236_v61 = vmul.f32 0.6931472, %v1966_v22  ;;  %v1280_v16 = vadd.f32 %v1276_v8, %v1212_v19  ;;  %v1316_v23 = vadd.f32 %v1312_v36, %v1212_v19 }
 0x3c6   :  { %v1238_v27 = vmul.f32 0.6931472, %v1968_v10 }
 0x3c7   :  { %v1239_v33 = vadd.f32 %v1236_v61, %v2698_v25  ;;  %v2746_v13 = vmax.f32 %v1274_v35, %v1280_v16  ;;  %v2748_v49 = vmax.f32 %v1310_v11, %v1316_v23 }
 0x3c8   :  { %v1970_v41 = vpop.eup %1969  ;;  %v1240_v30 = vadd.f32 %v1238_v27, %v2703_v9 }
 0x3c9   :  { %v1972_v3 = vpop.eup %1971  ;;  %v1264_v42 = vmul.f32 0.6931472, %v1970_v41  ;;  %v1284_v52 = vsub.f32 %v1274_v35, %v2746_v13  ;;  %v1292_v0 = vsub.f32 %v1280_v16, %v2746_v13  ;;  %v1320_v37 = vsub.f32 %v1310_v11, %v2748_v49 }
 0x3ca   :  { %v1266_v58 = vmul.f32 0.6931472, %v1972_v3  ;;  %v1328_v43 = vsub.f32 %v1316_v23, %v2748_v49  ;;  %v1341_v25 = vadd.f32 %v1269_v38, %v1239_v33  ;;  %v1342_v18 = vadd.f32 %v1270_v4, %v1240_v30 }
 0x3cb   :  { %v1974_v50 = vpop.eup %1973  ;;  %v1267_v39 = vadd.f32 %v1264_v42, %v2701_v21  ;;  %v1287_v51 = vmul.f32 1.442695, %v1284_v52  ;;  %v1295_v9 = vmul.f32 1.442695, %v1292_v0  ;;  %v1323_v24 = vmul.f32 1.442695, %v1320_v37 }
 0x3cc   :  { %v1976_v56 = vpop.eup %1975  ;;  %v1268_v1 = vadd.f32 %v1266_v58, %v2708_v20  ;;  %v1331_v40 = vmul.f32 1.442695, %v1328_v43  ;;  %v1369_v44 = vadd.f32 %v1305_v28, %v1239_v33  ;;  %v1370_v5 = vadd.f32 %v1306_v14, %v1240_v30 }
 0x3cd   :  { %v1978_v7 = vpop.eup %1977  ;;  %1981 = vpow2.f32 %v1287_v51  ;;  %v1297_v57 = vadd.f32 %v1976_v56, %v1974_v50  ;;  %v1343_v38 = vadd.f32 %v1275_v54, %v1267_v39  ;;  %v1371_v21 = vadd.f32 %v1311_v48, %v1267_v39 }
 0x3ce   :  { %v1980_v59 = vpop.eup %1979  ;;  %1983 = vpow2.f32 %v1295_v9  ;;  %v1344_v26 = vadd.f32 %v1276_v8, %v1268_v1  ;;  %v1372_v32 = vadd.f32 %v1312_v36, %v1268_v1 }
 0x3cf   :  { %1985 = vlog2.f32 %v1297_v57  ;;  %v1333_v20 = vadd.f32 %v1980_v59, %v1978_v7  ;;  %v2765_v62 = vmax.f32 %v1341_v25, %v1343_v38  ;;  %v2767_v28 = vmax.f32 %v1369_v44, %v1371_v21 }
 0x3d0   :  { %1987 = vpow2.f32 %v1323_v24  ;;  %v2769_v29 = vmax.f32 %v1342_v18, %v1344_v26  ;;  %v2771_v54 = vmax.f32 %v1370_v5, %v1372_v32 }
 0x3d1   :  { %1989 = vpow2.f32 %v1331_v40  ;;  %v1347_v48 = vsub.f32 %v1341_v25, %v2765_v62  ;;  %v1355_v2 = vsub.f32 %v1343_v38, %v2765_v62  ;;  %v1375_v60 = vsub.f32 %v1369_v44, %v2767_v28 }
 0x3d2   :  { %2104 = shalt.err (!%p2101_p4)
}
 0x3d3   :  { %s2105_s14 = scalar_lea.hbm %s2898_s8, 512 }
 0x3d4   :  { %p2106_p5 = scmp.ne.s32.totalorder %s2898_s8, %s2105_s14  ;;  %p2109_p6 = scmp.lt.u32.totalorder %s2105_s14, %s2898_s8 }
 0x3d6   :  { %p2111_p7 = pnand %p2109_p6, %p2106_p5 }
 0x3d8   :  { %2114 = shalt.err (!%p2111_p7)
}
 0x3d9   :  { %s2144_s18 = smov 256   ;;  %s2145_s19 = smov 16   ;;  %1991 = vlog2.f32 %v1333_v20  ;;  %v1348_v4 = vsub.f32 %v1342_v18, %v2769_v29  ;;  %v1356_v14 = vsub.f32 %v1344_v26, %v2769_v29  ;;  %v1376_v63 = vsub.f32 %v1370_v5, %v2771_v54  ;;  %v1982_v61 = vpop.eup %1981 }
 0x3da   :  { %1637 = dma.vmem_to_hbm [thread:$0]  %s1632_s12, 512, %s2898_s8, [#allocation5], %s2144_s18, %s2144_s18, %s2145_s19   ;;  %v1349_v47 = vmul.f32 1.442695, %v1347_v48  ;;  %v1357_v35 = vmul.f32 1.442695, %v1355_v2  ;;  %v1383_v11 = vsub.f32 %v1371_v21, %v2767_v28  ;;  %v1384_v36 = vsub.f32 %v1372_v32, %v2771_v54  ;;  %v1984_v16 = vpop.eup %1983 }
 0x3db   :  { %v1351_v19 = vmul.f32 1.442695, %v1348_v4  ;;  %v1359_v8 = vmul.f32 1.442695, %v1356_v14  ;;  %v1377_v22 = vmul.f32 1.442695, %v1375_v60  ;;  %v1986_v27 = vpop.eup %1985  ;;  %v1298_v33 = vadd.f32 %v1984_v16, %v1982_v61 }
 0x3dc   :  { %1993 = vpow2.f32 %v1349_v47  ;;  %v1379_v10 = vmul.f32 1.442695, %v1376_v63  ;;  %v1385_v23 = vmul.f32 1.442695, %v1383_v11  ;;  %v1387_v41 = vmul.f32 1.442695, %v1384_v36  ;;  %v1988_v30 = vpop.eup %1987 }
 0x3dd   :  { %1995 = vpow2.f32 %v1351_v19  ;;  %v1300_v3 = vmul.f32 0.6931472, %v1986_v27  ;;  %v1990_v42 = vpop.eup %1989  ;;  %v1397_v52 = vrot.slane %v2426_v6, 7  ;;  %v1433_v43 = vrot.slane %v2428_v34, 7  ;;  %s2147_s8 = smov [#allocation2]  }
 0x3de   :  { %1997 = vpow2.f32 %v1357_v35  ;;  %v1334_v58 = vadd.f32 %v1990_v42, %v1988_v30  ;;  %v1403_v9 = vrot.slane %v2443_v12, 7  ;;  %v1398_v63 = vrot.slane %v2433_v15, 7  ;;  %s1622_s22 = sshll.u32 %s2147_s8, 4  ;;  %s1623_s22 = int_to_ptr.vmem [resolvable:$true] %s1622_s22 }
 0x3df   :  { %1999 = vpow2.f32 %v1359_v8  ;;  %v1303_v37 = vadd.f32 %v1300_v3, %v2731_v55  ;;  %v1439_v55 = vrot.slane %v2445_v31, 7  ;;  %v1434_v36 = vrot.slane %v2435_v17, 7  ;;  %s2115_s23 = scalar_lea.vmem %s1623_s22, 64  ;;  %p2120_p9 = scmp.lt.s32.totalorder %s1623_s22, %s1623_s22 }
 0x3e0   :  { %2001 = vpow2.f32 %v1377_v22  ;;  %v1440_v15 = vrot.slane %v2461_v46, 7  ;;  %p2116_p8 = scmp.ne.s32.totalorder %s1623_s22, %s2115_s23  ;;  %p2121_p10 = scmp.lt.s32.totalorder %s2115_s23, %s2115_s23 }
 0x3e1   :  { %2003 = vpow2.f32 %v1379_v10  ;;  %v1401_v18 = vadd.f32 %v1397_v52, %v1303_v37  ;;  %v1437_v50 = vadd.f32 %v1433_v43, %v1303_v37 }
 0x3e2   :  { %2005 = vlog2.f32 %v1298_v33  ;;  %v1404_v33 = vrot.slane %v2459_v45, 7  ;;  %p2122_p11 = por %p2121_p10, %p2120_p9 }
 0x3e3   :  { %v1992_v0 = vpop.eup %1991  ;;  %2007 = vpow2.f32 %v1385_v23 }
 0x3e4   :  { %v1336_v25 = vmul.f32 0.6931472, %v1992_v0  ;;  %2009 = vpow2.f32 %v1387_v41  ;;  %p2123_p12 = pnand %p2122_p11, %p2116_p8 }
 0x3e5   :  { %2011 = vlog2.f32 %v1334_v58 }
 0x3e6   :  { %v1994_v39 = vpop.eup %1993  ;;  %v1339_v51 = vadd.f32 %v1336_v25, %v2733_v53 }
 0x3e7   :  { %v1996_v24 = vpop.eup %1995 }
 0x3e8   :  { %v1998_v56 = vpop.eup %1997  ;;  %v1407_v1 = vadd.f32 %v1403_v9, %v1339_v51  ;;  %v1443_v40 = vadd.f32 %v1439_v55, %v1339_v51 }
 0x3e9   :  { %v2000_v44 = vpop.eup %1999  ;;  %v1361_v5 = vadd.f32 %v1998_v56, %v1994_v39 }
 0x3ea   :  { %v2002_v7 = vpop.eup %2001  ;;  %v1362_v57 = vadd.f32 %v2000_v44, %v1996_v24  ;;  %v2807_v38 = vmax.f32 %v1401_v18, %v1407_v1  ;;  %v2809_v21 = vmax.f32 %v1437_v50, %v1443_v40 }
 0x3eb   :  { %v2004_v53 = vpop.eup %2003  ;;  %2013 = vlog2.f32 %v1361_v5 }
 0x3ec   :  { %v2006_v59 = vpop.eup %2005  ;;  %2015 = vlog2.f32 %v1362_v57  ;;  %v1411_v26 = vsub.f32 %v1401_v18, %v2807_v38  ;;  %v1419_v32 = vsub.f32 %v1407_v1, %v2807_v38  ;;  %v1447_v20 = vsub.f32 %v1437_v50, %v2809_v21 }
 0x3ed   :  { %v2008_v48 = vpop.eup %2007  ;;  %v1302_v2 = vmul.f32 0.6931472, %v2006_v59  ;;  %v1455_v60 = vsub.f32 %v1443_v40, %v2809_v21 }
 0x3ee   :  { %v2010_v4 = vpop.eup %2009  ;;  %v1389_v14 = vadd.f32 %v2008_v48, %v2002_v7  ;;  %v1413_v47 = vmul.f32 1.442695, %v1411_v26  ;;  %v1421_v8 = vmul.f32 1.442695, %v1419_v32  ;;  %v1449_v10 = vmul.f32 1.442695, %v1447_v20 }
 0x3ef   :  { %v2012_v35 = vpop.eup %2011  ;;  %v1304_v11 = vadd.f32 %v1302_v2, %v2746_v13  ;;  %v1390_v19 = vadd.f32 %v2010_v4, %v2004_v53  ;;  %v1457_v23 = vmul.f32 1.442695, %v1455_v60 }
 0x3f0   :  { %v1338_v22 = vmul.f32 0.6931472, %v2012_v35  ;;  %2017 = vlog2.f32 %v1389_v14 }
 0x3f1   :  { %2019 = vlog2.f32 %v1390_v19  ;;  %v1402_v61 = vadd.f32 %v1398_v63, %v1304_v11  ;;  %v1438_v16 = vadd.f32 %v1434_v36, %v1304_v11 }
 0x3f2   :  { %v1340_v27 = vadd.f32 %v1338_v22, %v2748_v49  ;;  %2021 = vpow2.f32 %v1413_v47 }
 0x3f3   :  { %2023 = vpow2.f32 %v1421_v8 }
 0x3f4   :  { %v1408_v13 = vadd.f32 %v1404_v33, %v1340_v27  ;;  %v1444_v41 = vadd.f32 %v1440_v15, %v1340_v27  ;;  %2025 = vpow2.f32 %v1449_v10 }
 0x3f5   :  { %v2014_v30 = vpop.eup %2013  ;;  %2027 = vpow2.f32 %v1457_v23 }
 0x3f6   :  { %v2016_v17 = vpop.eup %2015  ;;  %v1364_v3 = vmul.f32 0.6931472, %v2014_v30  ;;  %v2821_v42 = vmax.f32 %v1402_v61, %v1408_v13  ;;  %v2823_v0 = vmax.f32 %v1438_v16, %v1444_v41 }
 0x3f7   :  { %v1366_v37 = vmul.f32 0.6931472, %v2016_v17 }
 0x3f8   :  { %v1367_v49 = vadd.f32 %v1364_v3, %v2765_v62  ;;  %v1412_v45 = vsub.f32 %v1402_v61, %v2821_v42  ;;  %v1420_v58 = vsub.f32 %v1408_v13, %v2821_v42  ;;  %v1448_v46 = vsub.f32 %v1438_v16, %v2823_v0 }
 0x3f9   :  { %v1368_v25 = vadd.f32 %v1366_v37, %v2769_v29  ;;  %v1456_v18 = vsub.f32 %v1444_v41, %v2823_v0 }
 0x3fa   :  { %v2018_v50 = vpop.eup %2017  ;;  %v1415_v39 = vmul.f32 1.442695, %v1412_v45  ;;  %v1423_v51 = vmul.f32 1.442695, %v1420_v58  ;;  %v1451_v24 = vmul.f32 1.442695, %v1448_v46  ;;  %v1469_v56 = vadd.f32 %v1397_v52, %v1367_v49 }
 0x3fb   :  { %v2020_v1 = vpop.eup %2019  ;;  %v1392_v40 = vmul.f32 0.6931472, %v2018_v50  ;;  %v1459_v62 = vmul.f32 1.442695, %v1456_v18  ;;  %v1470_v44 = vadd.f32 %v1398_v63, %v1368_v25  ;;  %v1497_v5 = vadd.f32 %v1433_v43, %v1367_v49 }
 0x3fc   :  { %v2022_v7 = vpop.eup %2021  ;;  %v1394_v57 = vmul.f32 0.6931472, %v2020_v1  ;;  %2029 = vpow2.f32 %v1415_v39  ;;  %v1498_v29 = vadd.f32 %v1434_v36, %v1368_v25 }
 0x3fd   :  { %v2024_v53 = vpop.eup %2023  ;;  %v1395_v59 = vadd.f32 %v1392_v40, %v2767_v28  ;;  %2031 = vpow2.f32 %v1423_v51 }
 0x3fe   :  { %v2026_v26 = vpop.eup %2025  ;;  %v1396_v32 = vadd.f32 %v1394_v57, %v2771_v54  ;;  %v1425_v6 = vadd.f32 %v2024_v53, %v2022_v7  ;;  %2033 = vpow2.f32 %v1451_v24 }
 0x3ff   :  { %v2028_v52 = vpop.eup %2027  ;;  %2035 = vpow2.f32 %v1459_v62  ;;  %v1471_v20 = vadd.f32 %v1403_v9, %v1395_v59  ;;  %v1499_v34 = vadd.f32 %v1439_v55, %v1395_v59 }
 0x400   :  { %2037 = vlog2.f32 %v1425_v6  ;;  %v1461_v43 = vadd.f32 %v2028_v52, %v2026_v26  ;;  %v1472_v48 = vadd.f32 %v1404_v33, %v1396_v32  ;;  %v1500_v2 = vadd.f32 %v1440_v15, %v1396_v32 }
 0x401   :  { %v2841_v60 = vmax.f32 %v1469_v56, %v1471_v20  ;;  %v2843_v28 = vmax.f32 %v1497_v5, %v1499_v34 }
 0x402   :  { %2039 = vlog2.f32 %v1461_v43  ;;  %v2845_v54 = vmax.f32 %v1470_v44, %v1472_v48  ;;  %v2847_v4 = vmax.f32 %v1498_v29, %v1500_v2 }
 0x403   :  { %v1475_v14 = vsub.f32 %v1469_v56, %v2841_v60  ;;  %v1483_v12 = vsub.f32 %v1471_v20, %v2841_v60  ;;  %v1503_v31 = vsub.f32 %v1497_v5, %v2843_v28  ;;  %v1511_v9 = vsub.f32 %v1499_v34, %v2843_v28 }
 0x404   :  { %v1476_v55 = vsub.f32 %v1470_v44, %v2845_v54  ;;  %v1484_v63 = vsub.f32 %v1472_v48, %v2845_v54  ;;  %v1504_v47 = vsub.f32 %v1498_v29, %v2847_v4  ;;  %v1512_v35 = vsub.f32 %v1500_v2, %v2847_v4 }
 0x405   :  { %v1477_v11 = vmul.f32 1.442695, %v1475_v14  ;;  %v1485_v19 = vmul.f32 1.442695, %v1483_v12  ;;  %v1505_v27 = vmul.f32 1.442695, %v1503_v31 }
 0x406   :  { %v2030_v8 = vpop.eup %2029  ;;  %v1479_v36 = vmul.f32 1.442695, %v1476_v55  ;;  %v1487_v10 = vmul.f32 1.442695, %v1484_v63  ;;  %v1507_v13 = vmul.f32 1.442695, %v1504_v47 }
 0x407   :  { %v2032_v22 = vpop.eup %2031  ;;  %2041 = vpow2.f32 %v1477_v11  ;;  %v1513_v30 = vmul.f32 1.442695, %v1511_v9  ;;  %v1515_v3 = vmul.f32 1.442695, %v1512_v35 }
 0x408   :  { %v2034_v61 = vpop.eup %2033  ;;  %v1426_v16 = vadd.f32 %v2032_v22, %v2030_v8  ;;  %2043 = vpow2.f32 %v1479_v36 }
 0x409   :  { %v2036_v23 = vpop.eup %2035  ;;  %2045 = vpow2.f32 %v1485_v19 }
 0x40a   :  { %v2038_v33 = vpop.eup %2037  ;;  %2047 = vlog2.f32 %v1426_v16  ;;  %v1462_v15 = vadd.f32 %v2036_v23, %v2034_v61 }
 0x40b   :  { %v1428_v41 = vmul.f32 0.6931472, %v2038_v33  ;;  %2049 = vpow2.f32 %v1487_v10 }
 0x40c   :  { %v2040_v17 = vpop.eup %2039  ;;  %2051 = vlog2.f32 %v1462_v15 }
 0x40d   :  { %v1431_v37 = vadd.f32 %v1428_v41, %v2807_v38  ;;  %v1464_v49 = vmul.f32 0.6931472, %v2040_v17  ;;  %2053 = vpow2.f32 %v1505_v27 }
 0x40e   :  { %2055 = vpow2.f32 %v1507_v13 }
 0x40f   :  { %v1467_v45 = vadd.f32 %v1464_v49, %v2809_v21  ;;  %2057 = vpow2.f32 %v1513_v30 }
 0x410   :  { %2059 = vpow2.f32 %v1515_v3 }
 0x411   :  { %v2042_v58 = vpop.eup %2041  ;;  %v2859_v46 = vmax.f32 %v1431_v37, %v1467_v45 }
 0x412   :  { %v2044_v25 = vpop.eup %2043 }
 0x413   :  { %v2046_v18 = vpop.eup %2045  ;;  %v1527_v50 = vsub.f32 %v1431_v37, %v2859_v46  ;;  %v1535_v39 = vsub.f32 %v1467_v45, %v2859_v46  ;;  %v1555_v37 = vlaneseq }
 0x414   :  { %v2048_v51 = vpop.eup %2047  ;;  %v1489_v24 = vadd.f32 %v2046_v18, %v2042_v58 }
 0x415   :  { %v2050_v56 = vpop.eup %2049  ;;  %v1430_v38 = vmul.f32 0.6931472, %v2048_v51  ;;  %v1529_v1 = vmul.f32 1.442695, %v1527_v50  ;;  %v1537_v40 = vmul.f32 1.442695, %v1535_v39 }
 0x416   :  { %v2052_v62 = vpop.eup %2051  ;;  %v1490_v44 = vadd.f32 %v2050_v56, %v2044_v25  ;;  %2061 = vlog2.f32 %v1489_v24  ;;  %v1556_v45 = vshrl.u32 %v1555_v37, 7  ;;  %vm2870_vm6 = vcmp.lt.s32.totalorder %v1555_v37, 256 }
 0x417   :  { %v2054_v21 = vpop.eup %2053  ;;  %v1432_v5 = vadd.f32 %v1430_v38, %v2821_v42  ;;  %v1466_v7 = vmul.f32 0.6931472, %v2052_v62  ;;  %2063 = vpow2.f32 %v1529_v1 }
 0x418   :  { %v2056_v57 = vpop.eup %2055  ;;  %2065 = vlog2.f32 %v1490_v44 }
 0x419   :  { %v2058_v29 = vpop.eup %2057  ;;  %v1468_v53 = vadd.f32 %v1466_v7, %v2823_v0  ;;  %2067 = vpow2.f32 %v1537_v40 }
 0x41a   :  { %v2060_v59 = vpop.eup %2059  ;;  %v1517_v26 = vadd.f32 %v2058_v29, %v2054_v21 }
 0x41b   :  { %v1518_v32 = vadd.f32 %v2060_v59, %v2056_v57  ;;  %v1526_v6 = vmax.f32 %v1432_v5, %v1468_v53 }
 0x41c   :  { %2069 = vlog2.f32 %v1517_v26 }
 0x41d   :  { %2071 = vlog2.f32 %v1518_v32  ;;  %v1528_v52 = vsub.f32 %v1432_v5, %v1526_v6  ;;  %v1536_v20 = vsub.f32 %v1468_v53, %v1526_v6 }
 0x41f   :  { %v1531_v34 = vmul.f32 1.442695, %v1528_v52  ;;  %v1539_v43 = vmul.f32 1.442695, %v1536_v20 }
 0x420   :  { %v2062_v48 = vpop.eup %2061 }
 0x421   :  { %v2064_v42 = vpop.eup %2063  ;;  %v1492_v2 = vmul.f32 0.6931472, %v2062_v48  ;;  %2073 = vpow2.f32 %v1531_v34 }
 0x422   :  { %v2066_v14 = vpop.eup %2065  ;;  %2075 = vpow2.f32 %v1539_v43 }
 0x423   :  { %v2068_v12 = vpop.eup %2067  ;;  %v1494_v31 = vmul.f32 0.6931472, %v2066_v14  ;;  %v1495_v0 = vadd.f32 %v1492_v2, %v2841_v60 }
 0x424   :  { %v1541_v9 = vadd.f32 %v2068_v12, %v2064_v42 }
 0x425   :  { %v1496_v55 = vadd.f32 %v1494_v31, %v2845_v54 }
 0x426   :  { %v2070_v63 = vpop.eup %2069  ;;  %2077 = vlog2.f32 %v1541_v9 }
 0x427   :  { %v2072_v47 = vpop.eup %2071  ;;  %v1520_v35 = vmul.f32 0.6931472, %v2070_v63 }
 0x428   :  { %v1522_v11 = vmul.f32 0.6931472, %v2072_v47 }
 0x429   :  { %v1523_v19 = vadd.f32 %v1520_v35, %v2843_v28 }
 0x42a   :  { %v1524_v8 = vadd.f32 %v1522_v11, %v2847_v4  ;;  %v2146_v4 = vmov 1966171168  }
 0x42b   :  { %v2074_v36 = vpop.eup %2073  ;;  %v1572_v22 = vmax.f32 %v1495_v0, %v1523_v19  ;;  %v1553_v3 = vunpack.c.l.s4 %v2146_v4 }
 0x42c   :  { %v2076_v10 = vpop.eup %2075  ;;  %v1573_v61 = vmax.f32 %v1496_v55, %v1524_v8 }
 0x42d   :  { %v1542_v16 = vadd.f32 %v2076_v10, %v2074_v36  ;;  %v1574_v23 = vsub.f32 %v1495_v0, %v1572_v22  ;;  %v1582_v27 = vsub.f32 %v1523_v19, %v1572_v22  ;;  %v1554_v49 = vunpack.c.0.s8 %v1553_v3 }
 0x42e   :  { %v1575_v60 = vsub.f32 %v1496_v55, %v1573_v61  ;;  %v1583_v33 = vsub.f32 %v1524_v8, %v1573_v61 }
 0x42f   :  { %2079 = vlog2.f32 %v1542_v16  ;;  %v1576_v54 = vmul.f32 1.442695, %v1574_v23  ;;  %v1584_v15 = vmul.f32 1.442695, %v1582_v27  ;;  %v1557_v51 = vsub.s32 %v1554_v49, %v1556_v45 }
 0x430   :  { %v2078_v13 = vpop.eup %2077  ;;  %v1578_v41 = vmul.f32 1.442695, %v1575_v60  ;;  %v1586_v30 = vmul.f32 1.442695, %v1583_v33 }
 0x431   :  { %v1544_v17 = vmul.f32 0.6931472, %v2078_v13  ;;  %2081 = vpow2.f32 %v1576_v54 }
 0x432   :  { %2083 = vpow2.f32 %v1578_v41 }
 0x433   :  { %v1547_v28 = vadd.f32 %v1544_v17, %v2859_v46  ;;  %2085 = vpow2.f32 %v1584_v15 }
 0x434   :  { %2087 = vpow2.f32 %v1586_v30 }
 0x439   :  { %v2080_v58 = vpop.eup %2079 }
 0x43a   :  { %v1546_v25 = vmul.f32 0.6931472, %v2080_v58 }
 0x43b   :  { %v2082_v18 = vpop.eup %2081 }
 0x43c   :  { %v2084_v50 = vpop.eup %2083  ;;  %v1548_v39 = vadd.f32 %v1546_v25, %v1526_v6 }
 0x43d   :  { %v2086_v24 = vpop.eup %2085 }
 0x43e   :  { %v2088_v56 = vpop.eup %2087  ;;  %v1551_v38 = vcombine.low %v1547_v28, %v1548_v39  ;;  %v1588_v1 = vadd.f32 %v2086_v24, %v2082_v18 }
 0x43f   :  { %v1589_v40 = vadd.f32 %v2088_v56, %v2084_v50 }
 0x440   :  { %v1558_v62 = vrot.slane %v1551_v38, %v1557_v51  ;;  %2089 = vlog2.f32 %v1588_v1 }
 0x441   :  { %2091 = vlog2.f32 %v1589_v40 }
 0x442   :  { %v1565_v44 = vrot.slane %v1558_v62, %v1557_v51 }
 0x444   :  { %1571 = vst.msk [vmem:[#allocation2] ss:$2 sm:$0x3] %vm2870_vm6, %v1565_v44 }
 0x44a   :  { %v2090_v21 = vpop.eup %2089 }
 0x44b   :  { %v2092_v5 = vpop.eup %2091  ;;  %v1591_v7 = vmul.f32 0.6931472, %v2090_v21 }
 0x44c   :  { %v1593_v57 = vmul.f32 0.6931472, %v2092_v5 }
 0x44d   :  { %v1594_v29 = vadd.f32 %v1591_v7, %v1572_v22 }
 0x44e   :  { %v1595_v53 = vadd.f32 %v1593_v57, %v1573_v61 }
 0x450   :  { %v1598_v59 = vcombine.low %v1594_v29, %v1595_v53 }
 0x452   :  { %v1605_v26 = vrot.slane %v1598_v59, %v1557_v51 }
 0x454   :  { %v1612_v32 = vrot.slane %v1605_v26, %v1557_v51 }
 0x456   :  { %1615 = vst.msk [vmem:[#allocation2 + $0x1] ss:$2 sm:$0x3] %vm2870_vm6, %v1612_v32 }
 0x457   :  { %2126 = shalt.err (!%p2123_p12)
}
 0x458   :  { %s2127_s25 = scalar_lea.hbm %s2897_s7, 64 }
 0x459   :  { %p2128_p13 = scmp.ne.s32.totalorder %s2897_s7, %s2127_s25  ;;  %p2131_p0 = scmp.lt.u32.totalorder %s2127_s25, %s2897_s7 }
 0x45b   :  { %p2133_p1 = pnand %p2131_p0, %p2128_p13 }
 0x45d   :  { %2136 = shalt.err (!%p2133_p1)
}
 0x45e   :  { %1625 = dma.vmem_to_hbm [thread:$0]  %s1623_s22, 64, %s2897_s7, [#allocation3]  }
 0x45f   :  { %2137 = dma.done.wait [#allocation3], 64  }
 0x460   :  { %2138 = vsyncadd [#allocation3], 4294967232 }
 0x461   :  { %2139 = dma.done.wait [#allocation5], 512  }
 0x462   :  { %2140 = vsyncadd [#allocation5], 4294966784 }
 0x463   :  { %1644 = vsyncpa [#allocation3], 1 }
 0x464   :  { %1645 = vsyncpa [#allocation5], 1 }

</bundles_post_ra>
